<compile_context>
chip_gen: v7x
topology: tpu7x:2x2x1
jax: 0.10.0
libtpu: 0.0.40
codegen_flags: <defaults>
</compile_context>

<pallas_src>
import math

import jax
import jax.numpy as jnp
from jax.experimental import pallas as pl
from jax.experimental.pallas import tpu as pltpu


def mlp_kernel(x_ref,
               w1_ref, b1_ref,
               w2_ref, b2_ref,
               w3_ref, b3_ref,
               w4_ref, b4_ref,
               w5t_ref, b5_ref,
               o_ref):
    # Five fused Linear+ReLU stages.  The first four matmuls hit the MXU with
    # f32 accumulators; ReLU is a VPU max against 0.  Activations are cast
    # back to the weight dtype (bf16 by default) between MXU layers.  The
    # final 16->1 layer is done on the VPU (+XLU lane reduce) in f32.
    cdt = w1_ref.dtype
    h = x_ref[...]
    h = jnp.maximum(
        jnp.dot(h, w1_ref[...], preferred_element_type=jnp.float32) + b1_ref[...], 0.0)
    h = jnp.maximum(
        jnp.dot(h.astype(cdt), w2_ref[...], preferred_element_type=jnp.float32)
        + b2_ref[...], 0.0)
    h = jnp.maximum(
        jnp.dot(h.astype(cdt), w3_ref[...], preferred_element_type=jnp.float32)
        + b3_ref[...], 0.0)
    h = jnp.maximum(
        jnp.dot(h.astype(cdt), w4_ref[...], preferred_element_type=jnp.float32)
        + b4_ref[...], 0.0)
    # fc5 (16 -> 1): elementwise multiply with the f32 row-vector weight and a
    # lane reduction; avoids pushing a 1-lane matmul through the MXU.
    y = jnp.sum(h * w5t_ref[...], axis=-1, keepdims=True) + b5_ref[...]
    o_ref[...] = jnp.maximum(y, 0.0).astype(o_ref.dtype)


def _vmem_capacity_bytes():
    try:
        return int(pltpu.get_tpu_info().vmem_capacity_bytes)
    except Exception:
        return 64 << 20  # conservative (v7x per-TensorCore VMEM)


def mlp_forward(x, params, *, compute_dtype=jnp.bfloat16, batch_tile=None):
    """x: [B, D_in].  params: list of 5 (W [in, out], b [*, out]) tuples."""
    assert len(params) == 5, "MLP has exactly 5 Linear layers"
    orig_B, D_in = x.shape
    hidden_dims = [int(w.shape[1]) for w, _ in params]  # [1024, 256, 64, 16, 1]
    D_out = hidden_dims[-1]

    # Batch tile: 128 works on all of v5e/v6e/v7x; 256 for large batches
    # streams the 2x256^2 MXU (v6e/v7x) more fully and halves grid steps.
    if batch_tile is None:
        batch_tile = 256 if orig_B >= 512 else 128

    # Pad the batch to a multiple of the tile.  Padded rows compute
    # relu(0*W + b) internally and are sliced off at the end.
    B = int(math.ceil(orig_B / batch_tile)) * batch_tile
    x = x.astype(compute_dtype)
    if B != orig_B:
        x = jnp.pad(x, ((0, B - orig_B), (0, 0)))
    num_tiles = B // batch_tile

    # Flatten params into an interleaved arg list: w1,b1,...,w4,b4,w5t,b5.
    # First four weights go to compute_dtype (bf16 by default); biases stay
    # f32 (added to the f32 accumulator).  fc5's weight is kept in f32 as a
    # [1, 16] row vector for the VPU path.
    flat = []
    for layer, (w, b) in enumerate(params):
        b2d = jnp.asarray(b, dtype=jnp.float32).reshape(1, -1)
        if layer < 4:
            flat.extend([jnp.asarray(w, dtype=compute_dtype), b2d])
        else:
            w5t = jnp.asarray(w, dtype=jnp.float32).reshape(w.shape[0], w.shape[1]).T
            flat.extend([w5t, b2d])  # [1, 16], [1, 1]

    # Weights/biases: constant index_map -> fetched once, resident in VMEM,
    # single-buffered (no point double-buffering grid-invariant blocks).
    def resident_spec(arr):
        return pl.BlockSpec(arr.shape, lambda i: (0, 0),
                            pipeline_mode=pl.Buffered(1))

    # Activation input: deeper pipeline only when the grid is long enough for
    # DMA jitter to matter (costs one extra x tile of VMEM).
    if num_tiles >= 4:
        x_spec = pl.BlockSpec((batch_tile, D_in), lambda i: (i, 0),
                              pipeline_mode=pl.Buffered(3))
        x_buffers = 3
    else:
        x_spec = pl.BlockSpec((batch_tile, D_in), lambda i: (i, 0))
        x_buffers = 2

    in_specs = [x_spec] + [resident_spec(a) for a in flat]
    out_spec = pl.BlockSpec((batch_tile, D_out), lambda i: (i, 0))

    # VMEM budget: weights once + pipelined x tiles + double-buffered output
    # tiles + lane-padded per-layer temporaries + headroom.  Assert against
    # the chip's real capacity (64 MiB/core on v7x) instead of silently
    # clamping.
    itemsize = jnp.dtype(compute_dtype).itemsize
    w_bytes = sum(int(a.size) * a.dtype.itemsize for a in flat)
    x_bytes = x_buffers * batch_tile * D_in * itemsize
    out_bytes = 2 * batch_tile * max(D_out, 128) * 4
    act_bytes = 2 * batch_tile * sum(max(d, 128) for d in hidden_dims) * 4
    headroom = 6 << 20
    vmem_required = w_bytes + x_bytes + out_bytes + act_bytes + headroom
    vmem_capacity = _vmem_capacity_bytes()
    assert vmem_required <= int(0.9 * vmem_capacity), (
        f"MLP kernel needs ~{vmem_required >> 20} MiB VMEM but only "
        f"{vmem_capacity >> 20} MiB is available; use bf16 weights and/or a "
        f"smaller batch_tile.")
    vmem_limit = max(vmem_required, 16 << 20)

    # Small-batch / latency regime: keep both tiles on one core so the
    # resident weights are DMA'd once (matters on v7x's 2 TensorCores).
    semantics = ("arbitrary",) if num_tiles <= 2 else ("parallel",)

    flops = 2 * B * sum(int(w.shape[0]) * int(w.shape[1]) for w, _ in params)
    bytes_accessed = int(x.size) * itemsize + w_bytes + B * D_out * 4

    out = pl.pallas_call(
        mlp_kernel,
        out_shape=jax.ShapeDtypeStruct((B, D_out), jnp.float32),
        grid_spec=pltpu.PrefetchScalarGridSpec(
            num_scalar_prefetch=0,
            grid=(num_tiles,),
            in_specs=in_specs,
            out_specs=out_spec,
        ),
        compiler_params=pltpu.CompilerParams(
            dimension_semantics=semantics,
            vmem_limit_bytes=int(vmem_limit)),
        cost_estimate=pl.CostEstimate(
            flops=int(flops),
            transcendentals=0,
            bytes_accessed=int(bytes_accessed)),
    )(x, *flat)

    return out[:orig_B]


def init_mlp_params(key, input_dim):
    """Mirror PyTorch _initialize_weights: W ~ U(0, 0.01), b = 0.
    Weights generated directly in [in, out] layout (synthetic init)."""
    dims = [input_dim, 1024, 256, 64, 16, 1]
    params = []
    for i in range(len(dims) - 1):
        key, sub = jax.random.split(key)
        w = jax.random.uniform(sub, (dims[i], dims[i + 1]),
                               dtype=jnp.float32, minval=0.0, maxval=0.01)
        b = jnp.zeros((1, dims[i + 1]), dtype=jnp.float32)
        params.append((w, b))
    return params


def mlp_reference_f32(x, params):
    """Pure f32 reference (PyTorch-equivalent math)."""
    h = x
    for w, b in params:
        h = jnp.maximum(h @ w + b, 0.0)
    return h


def mlp_reference_mirrored(x, params, compute_dtype):
    """Reference mirroring the kernel's dtype plan: layers 1-4 bf16 in / f32
    accumulate, layer 5 in f32."""
    h = x.astype(compute_dtype)
    for layer, (w, b) in enumerate(params):
        if layer < 4:
            acc = jnp.dot(h.astype(compute_dtype), w.astype(compute_dtype),
                          preferred_element_type=jnp.float32)
            h = jnp.maximum(acc + b.astype(jnp.float32), 0.0)
        else:
            acc = jnp.dot(h.astype(jnp.float32), w.astype(jnp.float32),
                          preferred_element_type=jnp.float32)
            h = jnp.maximum(acc + b.astype(jnp.float32), 0.0)
    return h


if __name__ == "__main__":
    key = jax.random.PRNGKey(0)
    k_x, k_p = jax.random.split(key)

    # Small shapes: batch=8, input_dim=256 (module default is 4096; the hidden
    # dims 1024/256/64/16/1 are fixed by the module definition).
    B, D_IN = 8, 256
    x = jax.random.normal(k_x, (B, D_IN), dtype=jnp.float32)
    params = init_mlp_params(k_p, D_IN)

    out = jax.block_until_ready(mlp_forward(x, params))  # bf16 default path
    assert out.shape == (B, 1), out.shape

    ref_mirror = mlp_reference_mirrored(x, params, jnp.bfloat16)
    ref_f32 = mlp_reference_f32(x, params)

    # Tight check against a reference with identical dtype handling, plus a
    # looser sanity check against the pure-f32 math (bf16 quantization error).
    assert jnp.allclose(out, ref_mirror, atol=1e-4, rtol=1e-3), (
        "mismatch vs bf16-mirrored reference")
    assert jnp.allclose(out, ref_f32, atol=1e-3, rtol=5e-2), (
        "mismatch vs f32 reference beyond bf16 quantization error")

    print("KERNEL_OK")
</pallas_src>

<mosaic_0001>
module attributes {stable_mosaic.version = 11 : i64} {
  func.func @mlp_kernel(%arg0: i32, %arg1: memref<128x256xbf16, #tpu.memory_space<vmem>>, %arg2: memref<256x1024xbf16, #tpu.memory_space<vmem>>, %arg3: memref<1x1024xf32, #tpu.memory_space<vmem>>, %arg4: memref<1024x256xbf16, #tpu.memory_space<vmem>>, %arg5: memref<1x256xf32, #tpu.memory_space<vmem>>, %arg6: memref<256x64xbf16, #tpu.memory_space<vmem>>, %arg7: memref<1x64xf32, #tpu.memory_space<vmem>>, %arg8: memref<64x16xbf16, #tpu.memory_space<vmem>>, %arg9: memref<1x16xf32, #tpu.memory_space<vmem>>, %arg10: memref<1x16xf32, #tpu.memory_space<vmem>>, %arg11: memref<1x1xf32, #tpu.memory_space<vmem>>, %arg12: memref<128x1xf32, #tpu.memory_space<vmem>>) attributes {dimension_semantics = [#tpu.dimension_semantics<arbitrary>], iteration_bounds = array<i64: 1>, scalar_prefetch = 0 : i64, scratch_operands = 0 : i64, tpu.core_type = #tpu.core_type<tc>, window_params = [{transform_indices = @transform_0, window_bounds = array<i64: 128, 256>}, {pipeline_mode = #tpu.pipeline_mode<synchronous>, transform_indices = @transform_1, window_bounds = array<i64: 256, 1024>}, {pipeline_mode = #tpu.pipeline_mode<synchronous>, transform_indices = @transform_2, window_bounds = array<i64: 1, 1024>}, {pipeline_mode = #tpu.pipeline_mode<synchronous>, transform_indices = @transform_3, window_bounds = array<i64: 1024, 256>}, {pipeline_mode = #tpu.pipeline_mode<synchronous>, transform_indices = @transform_4, window_bounds = array<i64: 1, 256>}, {pipeline_mode = #tpu.pipeline_mode<synchronous>, transform_indices = @transform_5, window_bounds = array<i64: 256, 64>}, {pipeline_mode = #tpu.pipeline_mode<synchronous>, transform_indices = @transform_6, window_bounds = array<i64: 1, 64>}, {pipeline_mode = #tpu.pipeline_mode<synchronous>, transform_indices = @transform_7, window_bounds = array<i64: 64, 16>}, {pipeline_mode = #tpu.pipeline_mode<synchronous>, transform_indices = @transform_8, window_bounds = array<i64: 1, 16>}, {pipeline_mode = #tpu.pipeline_mode<synchronous>, transform_indices = @transform_9, window_bounds = array<i64: 1, 16>}, {pipeline_mode = #tpu.pipeline_mode<synchronous>, transform_indices = @transform_10, window_bounds = array<i64: 1, 1>}, {transform_indices = @transform_11, window_bounds = array<i64: 128, 1>}]} {
    %c0 = arith.constant 0 : index
    %c0_0 = arith.constant 0 : index
    %0 = vector.load %arg1[%c0, %c0_0] : memref<128x256xbf16, #tpu.memory_space<vmem>>, vector<128x256xbf16>
    %c0_1 = arith.constant 0 : index
    %c0_2 = arith.constant 0 : index
    %1 = vector.load %arg2[%c0_1, %c0_2] : memref<256x1024xbf16, #tpu.memory_space<vmem>>, vector<256x1024xbf16>
    %cst = arith.constant dense<0.000000e+00> : vector<128x1024xf32>
    %2 = tpu.matmul %0, %1, %cst {dimension_numbers = #tpu.dot_dimension_numbers<[1], [0], [0], [1], [0, 0, 1, 1], [], []>} : vector<128x256xbf16>, vector<256x1024xbf16>, vector<128x1024xf32> -> vector<128x1024xf32>
    %c0_3 = arith.constant 0 : index
    %c0_4 = arith.constant 0 : index
    %3 = vector.load %arg3[%c0_3, %c0_4] : memref<1x1024xf32, #tpu.memory_space<vmem>>, vector<1x1024xf32>
    %4 = vector.broadcast %3 : vector<1x1024xf32> to vector<128x1024xf32>
    %5 = arith.addf %2, %4 : vector<128x1024xf32>
    %cst_5 = arith.constant 0.000000e+00 : f32
    %6 = vector.broadcast %cst_5 : f32 to vector<128x1024xf32>
    %7 = arith.maximumf %5, %6 : vector<128x1024xf32>
    %8 = arith.truncf %7 : vector<128x1024xf32> to vector<128x1024xbf16>
    %c0_6 = arith.constant 0 : index
    %c0_7 = arith.constant 0 : index
    %9 = vector.load %arg4[%c0_6, %c0_7] : memref<1024x256xbf16, #tpu.memory_space<vmem>>, vector<1024x256xbf16>
    %cst_8 = arith.constant dense<0.000000e+00> : vector<128x256xf32>
    %10 = tpu.matmul %8, %9, %cst_8 {dimension_numbers = #tpu.dot_dimension_numbers<[1], [0], [0], [1], [0, 0, 1, 1], [], []>} : vector<128x1024xbf16>, vector<1024x256xbf16>, vector<128x256xf32> -> vector<128x256xf32>
    %c0_9 = arith.constant 0 : index
    %c0_10 = arith.constant 0 : index
    %11 = vector.load %arg5[%c0_9, %c0_10] : memref<1x256xf32, #tpu.memory_space<vmem>>, vector<1x256xf32>
    %12 = vector.broadcast %11 : vector<1x256xf32> to vector<128x256xf32>
    %13 = arith.addf %10, %12 : vector<128x256xf32>
    %cst_11 = arith.constant 0.000000e+00 : f32
    %14 = vector.broadcast %cst_11 : f32 to vector<128x256xf32>
    %15 = arith.maximumf %13, %14 : vector<128x256xf32>
    %16 = arith.truncf %15 : vector<128x256xf32> to vector<128x256xbf16>
    %c0_12 = arith.constant 0 : index
    %c0_13 = arith.constant 0 : index
    %17 = vector.load %arg6[%c0_12, %c0_13] : memref<256x64xbf16, #tpu.memory_space<vmem>>, vector<256x64xbf16>
    %cst_14 = arith.constant dense<0.000000e+00> : vector<128x64xf32>
    %18 = tpu.matmul %16, %17, %cst_14 {dimension_numbers = #tpu.dot_dimension_numbers<[1], [0], [0], [1], [0, 0, 1, 1], [], []>} : vector<128x256xbf16>, vector<256x64xbf16>, vector<128x64xf32> -> vector<128x64xf32>
    %c0_15 = arith.constant 0 : index
    %c0_16 = arith.constant 0 : index
    %19 = vector.load %arg7[%c0_15, %c0_16] : memref<1x64xf32, #tpu.memory_space<vmem>>, vector<1x64xf32>
    %20 = vector.broadcast %19 : vector<1x64xf32> to vector<128x64xf32>
    %21 = arith.addf %18, %20 : vector<128x64xf32>
    %cst_17 = arith.constant 0.000000e+00 : f32
    %22 = vector.broadcast %cst_17 : f32 to vector<128x64xf32>
    %23 = arith.maximumf %21, %22 : vector<128x64xf32>
    %24 = arith.truncf %23 : vector<128x64xf32> to vector<128x64xbf16>
    %c0_18 = arith.constant 0 : index
    %c0_19 = arith.constant 0 : index
    %25 = vector.load %arg8[%c0_18, %c0_19] : memref<64x16xbf16, #tpu.memory_space<vmem>>, vector<64x16xbf16>
    %cst_20 = arith.constant dense<0.000000e+00> : vector<128x16xf32>
    %26 = tpu.matmul %24, %25, %cst_20 {dimension_numbers = #tpu.dot_dimension_numbers<[1], [0], [0], [1], [0, 0, 1, 1], [], []>} : vector<128x64xbf16>, vector<64x16xbf16>, vector<128x16xf32> -> vector<128x16xf32>
    %c0_21 = arith.constant 0 : index
    %c0_22 = arith.constant 0 : index
    %27 = vector.load %arg9[%c0_21, %c0_22] : memref<1x16xf32, #tpu.memory_space<vmem>>, vector<1x16xf32>
    %28 = vector.broadcast %27 : vector<1x16xf32> to vector<128x16xf32>
    %29 = arith.addf %26, %28 : vector<128x16xf32>
    %cst_23 = arith.constant 0.000000e+00 : f32
    %30 = vector.broadcast %cst_23 : f32 to vector<128x16xf32>
    %31 = arith.maximumf %29, %30 : vector<128x16xf32>
    %c0_24 = arith.constant 0 : index
    %c0_25 = arith.constant 0 : index
    %32 = vector.load %arg10[%c0_24, %c0_25] : memref<1x16xf32, #tpu.memory_space<vmem>>, vector<1x16xf32>
    %33 = vector.broadcast %32 : vector<1x16xf32> to vector<128x16xf32>
    %34 = arith.mulf %31, %33 : vector<128x16xf32>
    %cst_26 = arith.constant dense<0.000000e+00> : vector<128xf32>
    %35 = vector.multi_reduction <add>, %34, %cst_26 [1] : vector<128x16xf32> to vector<128xf32>
    %36 = vector.shape_cast %35 : vector<128xf32> to vector<128x1xf32>
    %c0_27 = arith.constant 0 : index
    %c0_28 = arith.constant 0 : index
    %37 = vector.load %arg11[%c0_27, %c0_28] : memref<1x1xf32, #tpu.memory_space<vmem>>, vector<1x1xf32>
    %38 = vector.broadcast %37 : vector<1x1xf32> to vector<128x1xf32>
    %39 = arith.addf %36, %38 : vector<128x1xf32>
    %cst_29 = arith.constant 0.000000e+00 : f32
    %40 = vector.broadcast %cst_29 : f32 to vector<128x1xf32>
    %41 = arith.maximumf %39, %40 : vector<128x1xf32>
    %c0_30 = arith.constant 0 : index
    %c0_31 = arith.constant 0 : index
    %42 = vector.load %arg12[%c0_30, %c0_31] : memref<128x1xf32, #tpu.memory_space<vmem>>, vector<128x1xf32>
    tpu.vector_store %arg12[%c0_30, %c0_31], %41 {strides = array<i32>} : memref<128x1xf32, #tpu.memory_space<vmem>>, vector<128x1xf32>,
    return
  }
  func.func @transform_0(%arg0: i32) -> (i32, i32) {
    %c0_i32 = arith.constant 0 : i32
    %c0_i32_0 = arith.constant 0 : i32
    return %arg0, %c0_i32 : i32, i32
  }
  func.func @transform_1(%arg0: i32) -> (i32, i32) {
    %c0_i32 = arith.constant 0 : i32
    %c0_i32_0 = arith.constant 0 : i32
    %c0_i32_1 = arith.constant 0 : i32
    return %c0_i32, %c0_i32_0 : i32, i32
  }
  func.func @transform_2(%arg0: i32) -> (i32, i32) {
    %c0_i32 = arith.constant 0 : i32
    %c0_i32_0 = arith.constant 0 : i32
    %c0_i32_1 = arith.constant 0 : i32
    return %c0_i32, %c0_i32_0 : i32, i32
  }
  func.func @transform_3(%arg0: i32) -> (i32, i32) {
    %c0_i32 = arith.constant 0 : i32
    %c0_i32_0 = arith.constant 0 : i32
    %c0_i32_1 = arith.constant 0 : i32
    return %c0_i32, %c0_i32_0 : i32, i32
  }
  func.func @transform_4(%arg0: i32) -> (i32, i32) {
    %c0_i32 = arith.constant 0 : i32
    %c0_i32_0 = arith.constant 0 : i32
    %c0_i32_1 = arith.constant 0 : i32
    return %c0_i32, %c0_i32_0 : i32, i32
  }
  func.func @transform_5(%arg0: i32) -> (i32, i32) {
    %c0_i32 = arith.constant 0 : i32
    %c0_i32_0 = arith.constant 0 : i32
    %c0_i32_1 = arith.constant 0 : i32
    return %c0_i32, %c0_i32_0 : i32, i32
  }
  func.func @transform_6(%arg0: i32) -> (i32, i32) {
    %c0_i32 = arith.constant 0 : i32
    %c0_i32_0 = arith.constant 0 : i32
    %c0_i32_1 = arith.constant 0 : i32
    return %c0_i32, %c0_i32_0 : i32, i32
  }
  func.func @transform_7(%arg0: i32) -> (i32, i32) {
    %c0_i32 = arith.constant 0 : i32
    %c0_i32_0 = arith.constant 0 : i32
    %c0_i32_1 = arith.constant 0 : i32
    return %c0_i32, %c0_i32_0 : i32, i32
  }
  func.func @transform_8(%arg0: i32) -> (i32, i32) {
    %c0_i32 = arith.constant 0 : i32
    %c0_i32_0 = arith.constant 0 : i32
    %c0_i32_1 = arith.constant 0 : i32
    return %c0_i32, %c0_i32_0 : i32, i32
  }
  func.func @transform_9(%arg0: i32) -> (i32, i32) {
    %c0_i32 = arith.constant 0 : i32
    %c0_i32_0 = arith.constant 0 : i32
    %c0_i32_1 = arith.constant 0 : i32
    return %c0_i32, %c0_i32_0 : i32, i32
  }
  func.func @transform_10(%arg0: i32) -> (i32, i32) {
    %c0_i32 = arith.constant 0 : i32
    %c0_i32_0 = arith.constant 0 : i32
    %c0_i32_1 = arith.constant 0 : i32
    return %c0_i32, %c0_i32_0 : i32, i32
  }
  func.func @transform_11(%arg0: i32) -> (i32, i32) {
    %c0_i32 = arith.constant 0 : i32
    %c0_i32_0 = arith.constant 0 : i32
    return %arg0, %c0_i32 : i32, i32
  }
}

</mosaic_0001>

<bundles_post_ra>
// kernel: tpu_custom_call.1
= control target key start
LH: loop header
LB: loop body
LE: loop exit
PB: predicated region body
PF: predicated region fallthrough
CT: control target
= control target key end

     0   :  { %s5036_s0 = inlined_call_operand.vmem [shape: bf16[128,256], index: 0, kind: input, shape index: {}]   ;;  %s5037_s1 = inlined_call_operand.hbm [shape: bf16[256,1024], index: 1, kind: input, shape index: {}]   ;;  %s5038_s2 = inlined_call_operand.vmem [shape: f32[1,1024], index: 2, kind: input, shape index: {}]   ;;  %s5039_s3 = inlined_call_operand.hbm [shape: bf16[1024,256], index: 3, kind: input, shape index: {}]   ;;  %s5040_s4 = inlined_call_operand.vmem [shape: f32[1,256], index: 4, kind: input, shape index: {}]   ;;  %s5041_s5 = inlined_call_operand.vmem [shape: bf16[256,64], index: 5, kind: input, shape index: {}]   ;;  %s5042_s6 = inlined_call_operand.vmem [shape: f32[1,64], index: 6, kind: input, shape index: {}]   ;;  %s5043_s7 = inlined_call_operand.vmem [shape: bf16[64,16], index: 7, kind: input, shape index: {}]   ;;  %s5044_s8 = inlined_call_operand.vmem [shape: f32[1,16], index: 8, kind: input, shape index: {}]   ;;  %s5045_s9 = inlined_call_operand.vmem [shape: f32[1,16], index: 9, kind: input, shape index: {}]   ;;  %s5046_s10 = inlined_call_operand.<no memory space> [shape: f32[1,1], index: 10, kind: input, shape index: {}]   ;;  %s5047_s11 = inlined_call_operand.vmem [shape: f32[128,1], index: 11, kind: output, shape index: {}]  }
   0x1   :  { %v16_v0 = vstv %s5046_s10 }
   0x2   :  { %17 = vst [vmem:[#allocation2] sm:$0x1] %v16_v0 }
   0x3   :  { %18 = vsyncpa [#allocation4], 0 }
   0x4   :  { %19 = vsyncpa [#allocation6], 0  ;;  %s4289_s19 = smov [#allocation3]   ;;  %s4241_s23 = scalar_lea.hbm %s5037_s1, 16384 }
   0x5   :  { %s27_s20 = sshll.u32 %s4289_s19, 4  ;;  %p4242_p0 = scmp.ne.s32.totalorder %s5037_s1, %s4241_s23  ;;  %s28_s20 = int_to_ptr.vmem [resolvable:$true] %s27_s20 }
   0x6   :  { %p4245_p1 = scmp.lt.u32.totalorder %s4241_s23, %s5037_s1 }
   0x8   :  { %p4247_p2 = pnand %p4245_p1, %p4242_p0 }
   0xa   :  { %4250 = shalt.err (!%p4247_p2)
}
   0xb   :  { %s4251_s10 = scalar_lea.vmem %s28_s20, 16384  ;;  %p4256_p4 = scmp.lt.s32.totalorder %s28_s20, %s28_s20 }
   0xc   :  { %p4252_p3 = scmp.ne.s32.totalorder %s28_s20, %s4251_s10  ;;  %p4257_p5 = scmp.lt.s32.totalorder %s4251_s10, %s4251_s10 }
   0xe   :  { %p4258_p6 = por %p4257_p5, %p4256_p4 }
  0x10   :  { %p4259_p7 = pnand %p4258_p6, %p4252_p3 }
  0x12   :  { %4262 = shalt.err (!%p4259_p7)
}
  0x13   :  { %s4290_s28 = smov 512   ;;  %s4291_s29 = smov 32  }
  0x14   :  { %33 = dma.hbm_to_vmem [thread:$0]  %s5037_s1, 16384, %s28_s20, [#allocation4], %s4290_s28, %s4290_s28, %s4291_s29  }
  0x15   :  { %s4292_s13 = smov [#allocation5]   ;;  %s4263_s17 = scalar_lea.hbm %s5039_s3, 16384 }
  0x16   :  { %s41_s14 = sshll.u32 %s4292_s13, 4  ;;  %p4264_p8 = scmp.ne.s32.totalorder %s5039_s3, %s4263_s17  ;;  %s42_s14 = int_to_ptr.vmem [resolvable:$true] %s41_s14 }
  0x17   :  { %p4267_p9 = scmp.lt.u32.totalorder %s4263_s17, %s5039_s3 }
  0x19   :  { %p4269_p10 = pnand %p4267_p9, %p4264_p8 }
  0x1b   :  { %4272 = shalt.err (!%p4269_p10)
}
  0x1c   :  { %s4273_s23 = scalar_lea.vmem %s42_s14, 16384  ;;  %p4278_p12 = scmp.lt.s32.totalorder %s42_s14, %s42_s14 }
  0x1d   :  { %p4274_p11 = scmp.ne.s32.totalorder %s42_s14, %s4273_s23  ;;  %p4279_p13 = scmp.lt.s32.totalorder %s4273_s23, %s4273_s23 }
  0x1f   :  { %p4280_p0 = por %p4279_p13, %p4278_p12 }
  0x21   :  { %p4281_p1 = pnand %p4280_p0, %p4274_p11 }
  0x23   :  { %4284 = shalt.err (!%p4281_p1)
}
  0x24   :  { %s4293_s1 = smov 128   ;;  %s4294_s20 = smov 8  }
  0x25   :  { %47 = dma.hbm_to_vmem [thread:$0]  %s5039_s3, 16384, %s42_s14, [#allocation6], %s4293_s1, %s4293_s1, %s4294_s20  }
  0x26   :  { %4285 = dma.done.wait [#allocation4], 16384  }
  0x27   :  { %4286 = vsyncadd [#allocation4], 4294950912 }
  0x28   :  { %4287 = dma.done.wait [#allocation6], 16384  }
  0x29   :  { %4288 = vsyncadd [#allocation6], 4294950912  ;;  %v85_v1 = vld [vmem:[#allocation3] sm:$0xff]  ;;  %v87_v40 = vld [vmem:[#allocation3 + $0x10] sm:$0xff]  ;;  %vm3194_vm0 = vcmask 523264   ;;  %vm3355_vm1 = vcmask 130048  }
  0x2a   :  { %v89_v2 = vld [vmem:[#allocation3 + $0x20] sm:$0xff]  ;;  %v91_v41 = vld [vmem:[#allocation3 + $0x30] sm:$0xff]  ;;  %vm3443_vm2 = vcmask 7168  }
  0x2b   :  { %v93_v3 = vld [vmem:[#allocation3 + $0x40] sm:$0xff]  ;;  %v3483_v4 = vcombine.high %v85_v1, %v89_v2  ;;  %v3482_v5 = vcombine.low %v85_v1, %v89_v2  ;;  %v95_v42 = vld [vmem:[#allocation3 + $0x50] sm:$0xff]  ;;  %v3487_v45 = vcombine.high %v87_v40, %v91_v41  ;;  %v3486_v46 = vcombine.low %v87_v40, %v91_v41  ;;  %v94_v40 = vld [vmem:[#allocation3 + $0x48] sm:$0xff] }
  0x2c   :  { %v97_v6 = vld [vmem:[#allocation3 + $0x60] sm:$0xff]  ;;  %v99_v47 = vld [vmem:[#allocation3 + $0x70] sm:$0xff]  ;;  %v98_v41 = vld [vmem:[#allocation3 + $0x68] sm:$0xff] }
  0x2d   :  { %v3491_v7 = vcombine.high %v93_v3, %v97_v6  ;;  %v101_v8 = vld [vmem:[#allocation3 + $0x80] sm:$0xff]  ;;  %975 = vmatprep.subr.bf16.mxu1 %v3483_v4  ;;  %v3490_v10 = vcombine.low %v93_v3, %v97_v6  ;;  %v3495_v49 = vcombine.high %v95_v42, %v99_v47  ;;  %v103_v50 = vld [vmem:[#allocation3 + $0x90] sm:$0xff]  ;;  %1201 = vmatprep.subr.bf16.mxu0 %v3487_v45 }
  0x2e   :  { %v105_v9 = vld [vmem:[#allocation3 + $0xa0] sm:$0xff]  ;;  %976 = vmatpush1.bf16.msra.mxu1 %v3482_v5  ;;  %v107_v51 = vld [vmem:[#allocation3 + $0xb0] sm:$0xff]  ;;  %1202 = vmatpush1.bf16.msra.mxu0 %v3486_v46  ;;  %v3494_v53 = vcombine.low %v95_v42, %v99_v47  ;;  %v3493_v47 = vcombine.high %v94_v40, %v98_v41 }
  0x2f   :  { %977 = vmatprep.subr.bf16.mxu1 %v3491_v7  ;;  %v3499_v11 = vcombine.high %v101_v8, %v105_v9  ;;  %v109_v12 = vld [vmem:[#allocation3 + $0xc0] sm:$0xff]  ;;  %v3498_v14 = vcombine.low %v101_v8, %v105_v9  ;;  %1203 = vmatprep.subr.bf16.mxu0 %v3495_v49  ;;  %v3503_v56 = vcombine.high %v103_v50, %v107_v51  ;;  %v111_v58 = vld [vmem:[#allocation3 + $0xd0] sm:$0xff]  ;;  %v102_v49 = vld [vmem:[#allocation3 + $0x88] sm:$0xff] }
  0x30   :  { %v113_v13 = vld [vmem:[#allocation3 + $0xe0] sm:$0xff]  ;;  %v115_v59 = vld [vmem:[#allocation3 + $0xf0] sm:$0xff]  ;;  %v3502_v63 = vcombine.low %v103_v50, %v107_v51  ;;  %v106_v50 = vld [vmem:[#allocation3 + $0xa8] sm:$0xff] }
  0x31   :  { %v3507_v15 = vcombine.high %v109_v12, %v113_v13  ;;  %v117_v16 = vld [vmem:[#allocation3 + $0x100] sm:$0xff]  ;;  %v3506_v19 = vcombine.low %v109_v12, %v113_v13  ;;  %v3511_v1 = vcombine.high %v111_v58, %v115_v59  ;;  %v119_v2 = vld [vmem:[#allocation3 + $0x110] sm:$0xff]  ;;  %v3510_v7 = vcombine.low %v111_v58, %v115_v59  ;;  %v114_v58 = vld [vmem:[#allocation3 + $0xe8] sm:$0xff] }
  0x32   :  { %978 = vmatpush1.bf16.msra.mxu1 %v3490_v10  ;;  %v121_v17 = vld [vmem:[#allocation3 + $0x120] sm:$0xff]  ;;  %1204 = vmatpush1.bf16.msra.mxu0 %v3494_v53  ;;  %v123_v3 = vld [vmem:[#allocation3 + $0x130] sm:$0xff] }
  0x33   :  { %979 = vmatprep.subr.bf16.mxu1 %v3499_v11  ;;  %v4004_v18 = vld [vmem:[%s5036_s0 + $0x4] ss:$8 sps:$4 sm:$0xff]   ;;  %v3515_v20 = vcombine.high %v117_v16, %v121_v17  ;;  %v3514_v23 = vcombine.low %v117_v16, %v121_v17  ;;  %1205 = vmatprep.subr.bf16.mxu0 %v3503_v56  ;;  %v127_v8 = vld [vmem:[#allocation3 + $0x150] sm:$0xff]  ;;  %v3519_v11 = vcombine.high %v119_v2, %v123_v3  ;;  %v4388_v42 = vld [vmem:[%s5036_s0] ss:$8 sps:$4 sm:$0xff]  }
  0x34   :  { %1007 = vmatprep.mubr.bf16.mxu1 %v4004_v18  ;;  %v125_v21 = vld [vmem:[#allocation3 + $0x140] sm:$0xff]  ;;  %1233 = vmatprep.mubr.bf16.mxu0 %v4004_v18  ;;  %v131_v9 = vld [vmem:[#allocation3 + $0x170] sm:$0xff] }
  0x35   :  { %v129_v22 = vld [vmem:[#allocation3 + $0x160] sm:$0xff]  ;;  %v3527_v17 = vcombine.high %v127_v8, %v131_v9  ;;  %v135_v18 = vld [vmem:[#allocation3 + $0x190] sm:$0xff] }
  0x36   :  { %980 = vmatpush1.bf16.msra.mxu1 %v3498_v14  ;;  %v3523_v24 = vcombine.high %v125_v21, %v129_v22  ;;  %v133_v25 = vld [vmem:[#allocation3 + $0x180] sm:$0xff]  ;;  %v3522_v27 = vcombine.low %v125_v21, %v129_v22  ;;  %1206 = vmatpush1.bf16.msra.mxu0 %v3502_v63  ;;  %v4393_v46 = vld [vmem:[%s5036_s0 + $0x14] ss:$8 sps:$4 sm:$0xff]   ;;  %v3500_v63 = vcombine.low %v102_v49, %v106_v50 }
  0x37   :  { %981 = vmatprep.subr.bf16.mxu1 %v3507_v15  ;;  %v137_v26 = vld [vmem:[#allocation3 + $0x1a0] sm:$0xff]  ;;  %1207 = vmatprep.subr.bf16.mxu0 %v3511_v1  ;;  %v3518_v15 = vcombine.low %v119_v2, %v123_v3  ;;  %v171_v53 = vld [vmem:[#allocation3 + $0x2b0] sm:$0xff]  ;;  %v118_v3 = vld [vmem:[#allocation3 + $0x108] sm:$0xff] }
  0x38   :  { %v3531_v28 = vcombine.high %v133_v25, %v137_v26  ;;  %v141_v29 = vld [vmem:[#allocation3 + $0x1c0] sm:$0xff]  ;;  %v3530_v31 = vcombine.low %v133_v25, %v137_v26  ;;  %v147_v25 = vld [vmem:[#allocation3 + $0x1f0] sm:$0xff] }
  0x39   :  { %v145_v30 = vld [vmem:[#allocation3 + $0x1e0] sm:$0xff] }
  0x3a   :  { %982 = vmatpush1.bf16.msra.mxu1 %v3506_v19  ;;  %v3539_v32 = vcombine.high %v141_v29, %v145_v30  ;;  %v149_v33 = vld [vmem:[#allocation3 + $0x200] sm:$0xff]  ;;  %v3538_v35 = vcombine.low %v141_v29, %v145_v30  ;;  %1208 = vmatpush1.bf16.msra.mxu0 %v3510_v7  ;;  %v139_v19 = vld [vmem:[#allocation3 + $0x1b0] sm:$0xff]  ;;  %v86_v29 = vld [vmem:[#allocation3 + $0x8] sm:$0xff] }
  0x3b   :  { %983 = vmatprep.subr.bf16.mxu1 %v3515_v20  ;;  %v153_v34 = vld [vmem:[#allocation3 + $0x220] sm:$0xff]  ;;  %1209 = vmatprep.subr.bf16.mxu0 %v3519_v11  ;;  %v90_v30 = vld [vmem:[#allocation3 + $0x28] sm:$0xff]  ;;  %v187_v7 = vld [vmem:[#allocation3 + $0x330] sm:$0xff] }
  0x3c   :  { %v3547_v36 = vcombine.high %v149_v33, %v153_v34  ;;  %v157_v37 = vld [vmem:[#allocation3 + $0x240] sm:$0xff]  ;;  %v3546_v39 = vcombine.low %v149_v33, %v153_v34  ;;  %v151_v34 = vld [vmem:[#allocation3 + $0x210] sm:$0xff]  ;;  %v3484_v45 = vcombine.low %v86_v29, %v90_v30 }
  0x3d   :  { %v161_v38 = vld [vmem:[#allocation3 + $0x260] sm:$0xff] }
  0x3e   :  { %984 = vmatpush1.bf16.msra.mxu1 %v3514_v23  ;;  %v3555_v43 = vcombine.high %v157_v37, %v161_v38  ;;  %v165_v44 = vld [vmem:[#allocation3 + $0x280] sm:$0xff]  ;;  %v3554_v52 = vcombine.low %v157_v37, %v161_v38  ;;  %1210 = vmatpush1.bf16.msra.mxu0 %v3518_v15  ;;  %v3526_v23 = vcombine.low %v127_v8, %v131_v9  ;;  %v126_v9 = vld [vmem:[#allocation3 + $0x148] sm:$0xff]  ;;  %v195_v15 = vld [vmem:[#allocation3 + $0x370] sm:$0xff] }
  0x3f   :  { %985 = vmatprep.subr.bf16.mxu1 %v3523_v24  ;;  %v169_v48 = vld [vmem:[#allocation3 + $0x2a0] sm:$0xff]  ;;  %v143_v24 = vld [vmem:[#allocation3 + $0x1d0] sm:$0xff]  ;;  %1211 = vmatprep.subr.bf16.mxu0 %v3527_v17  ;;  %v3485_v38 = vcombine.high %v86_v29, %v90_v30 }
  0x40   :  { %v3563_v54 = vcombine.high %v165_v44, %v169_v48  ;;  %v173_v55 = vld [vmem:[#allocation3 + $0x2c0] sm:$0xff]  ;;  %v3562_v60 = vcombine.low %v165_v44, %v169_v48  ;;  %v3543_v33 = vcombine.high %v143_v24, %v147_v25  ;;  %v3542_v37 = vcombine.low %v143_v24, %v147_v25  ;;  %v163_v44 = vld [vmem:[#allocation3 + $0x270] sm:$0xff] }
  0x41   :  { %v177_v57 = vld [vmem:[#allocation3 + $0x2e0] sm:$0xff]  ;;  %v199_v24 = vld [vmem:[#allocation3 + $0x390] sm:$0xff] }
  0x42   :  { %986 = vmatpush1.bf16.msra.mxu1 %v3522_v27  ;;  %v181_v61 = vld [vmem:[#allocation3 + $0x300] sm:$0xff]  ;;  %v3571_v0 = vcombine.high %v173_v55, %v177_v57  ;;  %v3570_v4 = vcombine.low %v173_v55, %v177_v57  ;;  %v3535_v27 = vcombine.high %v135_v18, %v139_v19  ;;  %1212 = vmatpush1.bf16.msra.mxu0 %v3526_v23  ;;  %v110_v57 = vld [vmem:[#allocation3 + $0xc8] sm:$0xff]  ;;  %v203_v25 = vld [vmem:[#allocation3 + $0x3b0] sm:$0xff] }
  0x43   :  { %987 = vmatprep.subr.bf16.mxu1 %v3531_v28  ;;  %v185_v62 = vld [vmem:[#allocation3 + $0x320] sm:$0xff]  ;;  %v3501_v55 = vcombine.high %v102_v49, %v106_v50  ;;  %v3509_v1 = vcombine.high %v110_v57, %v114_v58  ;;  %v3508_v8 = vcombine.low %v110_v57, %v114_v58  ;;  %v4424_v29 = vld [vmem:[%s5036_s0 + $0x30] ss:$8 sps:$4 sm:$0xff]  }
  0x44   :  { %v189_v5 = vld [vmem:[#allocation3 + $0x340] sm:$0xff]  ;;  %v3579_v10 = vcombine.high %v181_v61, %v185_v62  ;;  %v3578_v12 = vcombine.low %v181_v61, %v185_v62  ;;  %1213 = vmatprep.subr.bf16.mxu0 %v3535_v27  ;;  %v175_v61 = vld [vmem:[#allocation3 + $0x2d0] sm:$0xff]  ;;  %v142_v27 = vld [vmem:[#allocation3 + $0x1c8] sm:$0xff] }
  0x45   :  { %v193_v6 = vld [vmem:[#allocation3 + $0x360] sm:$0xff]  ;;  %v179_v62 = vld [vmem:[#allocation3 + $0x2f0] sm:$0xff] }
  0x46   :  { %988 = vmatpush1.bf16.msra.mxu1 %v3530_v31  ;;  %v197_v13 = vld [vmem:[#allocation3 + $0x380] sm:$0xff]  ;;  %v3587_v16 = vcombine.high %v189_v5, %v193_v6  ;;  %v3586_v20 = vcombine.low %v189_v5, %v193_v6  ;;  %v3534_v31 = vcombine.low %v135_v18, %v139_v19  ;;  %v3575_v5 = vcombine.high %v175_v61, %v179_v62  ;;  %v183_v6 = vld [vmem:[#allocation3 + $0x310] sm:$0xff]  ;;  %v134_v19 = vld [vmem:[#allocation3 + $0x188] sm:$0xff] }
  0x47   :  { %989 = vmatprep.subr.bf16.mxu1 %v3539_v32  ;;  %v201_v14 = vld [vmem:[#allocation3 + $0x3a0] sm:$0xff]  ;;  %v3583_v17 = vcombine.high %v183_v6, %v187_v7  ;;  %v4033_v57 = vld [vmem:[#allocation5 + $0x14] ss:$8 sps:$4 sm:$0xff]  }
  0x48   :  { %v205_v21 = vld [vmem:[#allocation3 + $0x3c0] sm:$0xff]  ;;  %v3595_v26 = vcombine.high %v197_v13, %v201_v14  ;;  %v3594_v28 = vcombine.low %v197_v13, %v201_v14  ;;  %1214 = vmatpush1.bf16.msra.mxu0 %v3534_v31  ;;  %v3574_v13 = vcombine.low %v175_v61, %v179_v62  ;;  %v191_v14 = vld [vmem:[#allocation3 + $0x350] sm:$0xff]  ;;  %v178_v61 = vld [vmem:[#allocation3 + $0x2e8] sm:$0xff] }
  0x49   :  { %v209_v22 = vld [vmem:[#allocation3 + $0x3e0] sm:$0xff]  ;;  %1215 = vmatprep.subr.bf16.mxu0 %v3543_v33  ;;  %v3591_v23 = vcombine.high %v191_v14, %v195_v15  ;;  %v3590_v31 = vcombine.low %v191_v14, %v195_v15  ;;  %v211_v33 = vld [vmem:[#allocation3 + $0x3f0] sm:$0xff] }
  0x4a   :  { %990 = vmatpush1.bf16.msra.mxu1 %v3538_v35  ;;  %v3603_v32 = vcombine.high %v205_v21, %v209_v22  ;;  %v155_v35 = vld [vmem:[#allocation3 + $0x230] sm:$0xff]  ;;  %v4412_v11 = vld [vmem:[%s5036_s0 + $0x20] ss:$8 sps:$4 sm:$0xff]  }
  0x4b   :  { %991 = vmatprep.subr.bf16.mxu1 %v3547_v36  ;;  %v3602_v36 = vcombine.low %v205_v21, %v209_v22  ;;  %v3550_v48 = vcombine.low %v151_v34, %v155_v35  ;;  %v3582_v22 = vcombine.low %v183_v6, %v187_v7  ;;  %v4031_v62 = vld [vmem:[#allocation5 + $0x10] ss:$8 sps:$4 sm:$0xff]   ;;  %v186_v6 = vld [vmem:[#allocation3 + $0x328] sm:$0xff] }
  0x4c   :  { %1216 = vmatpush1.bf16.msra.mxu0 %v3542_v37  ;;  %v150_v37 = vld [vmem:[#allocation3 + $0x208] sm:$0xff]  ;;  %v4037_v14 = vld [vmem:[#allocation5 + $0x30] ss:$8 sps:$4 sm:$0xff]  }
  0x4d   :  { %v4034_v7 = vld [vmem:[#allocation5 + $0x20] ss:$8 sps:$4 sm:$0xff]  }
  0x4e   :  { %992 = vmatpush1.bf16.msra.mxu1 %v3546_v39  ;;  %v3551_v39 = vcombine.high %v151_v34, %v155_v35  ;;  %v4429_v34 = vld [vmem:[%s5036_s0 + $0x44] ss:$8 sps:$4 sm:$0xff]   ;;  %v3599_v35 = vcombine.high %v199_v24, %v203_v25  ;;  %v4462_v15 = vld [vmem:[%s5036_s0 + $0x60] ss:$8 sps:$4 sm:$0xff]  }
  0x4f   :  { %993 = vmatprep.subr.bf16.mxu1 %v3555_v43  ;;  %v159_v43 = vld [vmem:[#allocation3 + $0x250] sm:$0xff] }
  0x50   :  { %1217 = vmatprep.subr.bf16.mxu0 %v3551_v39  ;;  %v3559_v51 = vcombine.high %v159_v43, %v163_v44  ;;  %v3558_v56 = vcombine.low %v159_v43, %v163_v44  ;;  %v158_v44 = vld [vmem:[#allocation3 + $0x248] sm:$0xff] }
  0x51   :  { %1218 = vmatpush1.bf16.msra.mxu0 %v3550_v48  ;;  %v4436_v48 = vld [vmem:[%s5036_s0 + $0x40] ss:$8 sps:$4 sm:$0xff]  }
  0x52   :  { %994 = vmatpush1.bf16.msra.mxu1 %v3554_v52  ;;  %v167_v52 = vld [vmem:[#allocation3 + $0x290] sm:$0xff]  ;;  %1219 = vmatprep.subr.bf16.mxu0 %v3559_v51 }
  0x53   :  { %995 = vmatprep.subr.bf16.mxu1 %v3563_v54  ;;  %v3492_v54 = vcombine.low %v94_v40, %v98_v41  ;;  %v3567_v59 = vcombine.high %v167_v52, %v171_v53  ;;  %v3566_v2 = vcombine.low %v167_v52, %v171_v53  ;;  %v3598_v40 = vcombine.low %v199_v24, %v203_v25  ;;  %v4441_v51 = vld [vmem:[%s5036_s0 + $0x54] ss:$8 sps:$4 sm:$0xff]   ;;  %v166_v53 = vld [vmem:[#allocation3 + $0x288] sm:$0xff] }
  0x54   :  { %v4045_v25 = vld [vmem:[#allocation5 + $0x54] ss:$8 sps:$4 sm:$0xff]  }
  0x55   :  { %1220 = vmatpush1.bf16.msra.mxu0 %v3558_v56 }
  0x56   :  { %996 = vmatpush1.bf16.msra.mxu1 %v3562_v60  ;;  %v4400_v60 = vld [vmem:[%s5036_s0 + $0x10] ss:$8 sps:$4 sm:$0xff]   ;;  %1221 = vmatprep.subr.bf16.mxu0 %v3567_v59 }
  0x57   :  { %997 = vmatprep.subr.bf16.mxu1 %v3571_v0  ;;  %v4405_v0 = vld [vmem:[%s5036_s0 + $0x24] ss:$8 sps:$4 sm:$0xff]  }
  0x58   :  { %v174_v59 = vld [vmem:[#allocation3 + $0x2c8] sm:$0xff] }
  0x59   :  { %1222 = vmatpush1.bf16.msra.mxu0 %v3566_v2  ;;  %v4036_v2 = vld [vmem:[#allocation5 + $0x24] ss:$8 sps:$4 sm:$0xff]  }
  0x5a   :  { %998 = vmatpush1.bf16.msra.mxu1 %v3570_v4  ;;  %v122_v4 = vld [vmem:[#allocation3 + $0x128] sm:$0xff]  ;;  %1223 = vmatprep.subr.bf16.mxu0 %v3575_v5 }
  0x5b   :  { %999 = vmatprep.subr.bf16.mxu1 %v3579_v10  ;;  %v130_v10 = vld [vmem:[#allocation3 + $0x168] sm:$0xff]  ;;  %v3516_v18 = vcombine.low %v118_v3, %v122_v4 }
  0x5c   :  { %v3525_v21 = vcombine.high %v126_v9, %v130_v10  ;;  %v182_v5 = vld [vmem:[#allocation3 + $0x308] sm:$0xff] }
  0x5d   :  { %1224 = vmatpush1.bf16.msra.mxu0 %v3574_v13  ;;  %v194_v13 = vld [vmem:[#allocation3 + $0x368] sm:$0xff] }
  0x5e   :  { %1000 = vmatpush1.bf16.msra.mxu1 %v3578_v12  ;;  %v3517_v12 = vcombine.high %v118_v3, %v122_v4  ;;  %1225 = vmatprep.subr.bf16.mxu0 %v3583_v17  ;;  %v4454_v3 = vld [vmem:[%s5036_s0 + $0x64] ss:$8 sps:$4 sm:$0xff]   ;;  %v3581_v17 = vcombine.high %v182_v5, %v186_v6 }
  0x5f   :  { %1001 = vmatprep.subr.bf16.mxu1 %v3587_v16  ;;  %v4417_v16 = vld [vmem:[%s5036_s0 + $0x34] ss:$8 sps:$4 sm:$0xff]  }
  0x61   :  { %1226 = vmatpush1.bf16.msra.mxu0 %v3582_v22  ;;  %v202_v22 = vld [vmem:[#allocation3 + $0x3a8] sm:$0xff] }
  0x62   :  { %1002 = vmatpush1.bf16.msra.mxu1 %v3586_v20  ;;  %v138_v20 = vld [vmem:[#allocation3 + $0x1a8] sm:$0xff]  ;;  %1227 = vmatprep.subr.bf16.mxu0 %v3591_v23 }
  0x63   :  { %1003 = vmatprep.subr.bf16.mxu1 %v3595_v26  ;;  %v3524_v26 = vcombine.low %v126_v9, %v130_v10  ;;  %v3533_v30 = vcombine.high %v134_v19, %v138_v20  ;;  %v4039_v9 = vld [vmem:[#allocation5 + $0x34] ss:$8 sps:$4 sm:$0xff]   ;;  %v3572_v10 = vcombine.low %v174_v59, %v178_v61  ;;  %v4040_v23 = vld [vmem:[#allocation5 + $0x40] ss:$8 sps:$4 sm:$0xff]  }
  0x65   :  { %1228 = vmatpush1.bf16.msra.mxu0 %v3590_v31 }
  0x66   :  { %1004 = vmatpush1.bf16.msra.mxu1 %v3594_v28  ;;  %v146_v28 = vld [vmem:[#allocation3 + $0x1e8] sm:$0xff]  ;;  %1229 = vmatprep.subr.bf16.mxu0 %v3599_v35 }
  0x67   :  { %1005 = vmatprep.subr.bf16.mxu1 %v3603_v32  ;;  %v207_v32 = vld [vmem:[#allocation3 + $0x3d0] sm:$0xff]  ;;  %v3541_v39 = vcombine.high %v142_v27, %v146_v28  ;;  %v3540_v43 = vcombine.low %v142_v27, %v146_v28  ;;  %v206_v27 = vld [vmem:[#allocation3 + $0x3c8] sm:$0xff] }
  0x68   :  { %v3607_v41 = vcombine.high %v207_v32, %v211_v33  ;;  %v3606_v50 = vcombine.low %v207_v32, %v211_v33  ;;  %v210_v28 = vld [vmem:[#allocation3 + $0x3e8] sm:$0xff] }
  0x69   :  { %1230 = vmatpush1.bf16.msra.mxu0 %v3598_v40  ;;  %v4478_v32 = vld [vmem:[%s5036_s0 + $0x70] ss:$8 sps:$4 sm:$0xff]  }
  0x6a   :  { %1006 = vmatpush1.bf16.msra.mxu1 %v3602_v36  ;;  %v3532_v36 = vcombine.low %v134_v19, %v138_v20  ;;  %1231 = vmatprep.subr.bf16.mxu0 %v3607_v41  ;;  %v4468_v19 = vld [vmem:[%s5036_s0 + $0x74] ss:$8 sps:$4 sm:$0xff]   ;;  %v3580_v20 = vcombine.low %v182_v5, %v186_v6  ;;  %v4048_v33 = vld [vmem:[#allocation5 + $0x64] ss:$8 sps:$4 sm:$0xff]   ;;  %v3604_v41 = vcombine.low %v206_v27, %v210_v28 }
  0x6b   :  { %1088 = vmatprep.subr.bf16.mxu1 %v3485_v38  ;;  %v154_v38 = vld [vmem:[#allocation3 + $0x228] sm:$0xff]  ;;  %v4051_v40 = vld [vmem:[#allocation5 + $0x74] ss:$8 sps:$4 sm:$0xff]  }
  0x6c   :  { %v3549_v49 = vcombine.high %v150_v37, %v154_v38  ;;  %v3548_v52 = vcombine.low %v150_v37, %v154_v38  ;;  %v88_v37 = vld [vmem:[#allocation3 + $0x18] sm:$0xff] }
  0x6d   :  { %1008 = vmatmul.mubr.bf16.vlgmr.msra.gmra.mrb[0].mxu1 %v4388_v42  ;;  %1232 = vmatpush1.bf16.msra.mxu0 %v3606_v50  ;;  %v92_v38 = vld [vmem:[#allocation3 + $0x38] sm:$0xff]  ;;  %v4054_v50 = vld [vmem:[#allocation5 + $0x84] ss:$8 sps:$4 sm:$0xff]  }
  0x6e   :  { %1089 = vmatpush1.bf16.msra.mxu1 %v3484_v45  ;;  %1017 = vmatprep.mubr.bf16.mxu1 %v4393_v46  ;;  %v162_v45 = vld [vmem:[#allocation3 + $0x268] sm:$0xff]  ;;  %v120_v6 = vld [vmem:[#allocation3 + $0x118] sm:$0xff] }
  0x6f   :  { %1090 = vmatprep.subr.bf16.mxu1 %v3493_v47  ;;  %v4030_v47 = vld [vmem:[#allocation5 + $0x4] ss:$8 sps:$4 sm:$0xff]   ;;  %v3557_v56 = vcombine.high %v158_v44, %v162_v45  ;;  %v3556_v58 = vcombine.low %v158_v44, %v162_v45  ;;  %v3489_v44 = vcombine.high %v88_v37, %v92_v38  ;;  %v96_v45 = vld [vmem:[#allocation3 + $0x58] sm:$0xff] }
  0x70   :  { %2399 = vmatprep.subr.bf16.mxu0 %v4030_v47  ;;  %1234 = vmatmul.mubr.bf16.vlgmr.msra.gmra.mrb[0].mxu0 %v4388_v42  ;;  %v100_v47 = vld [vmem:[#allocation3 + $0x78] sm:$0xff] }
  0x71   :  { %1243 = vmatprep.mubr.bf16.mxu0 %v4393_v46 }
  0x72   :  { %1091 = vmatpush1.bf16.msra.mxu1 %v3492_v54  ;;  %v170_v54 = vld [vmem:[#allocation3 + $0x2a8] sm:$0xff] }
  0x73   :  { %1092 = vmatprep.subr.bf16.mxu1 %v3501_v55  ;;  %v4028_v55 = vld [vmem:[#allocation5] ss:$8 sps:$4 sm:$0xff]   ;;  %v3564_v4 = vcombine.low %v166_v53, %v170_v54 }
  0x74   :  { %2400 = vmatpush1.bf16.msra.mxu0 %v4028_v55  ;;  %v108_v55 = vld [vmem:[#allocation3 + $0xb8] sm:$0xff] }
  0x75   :  { %1018 = vmatmul.mubr.bf16.gmra.mrb[4].mxu1 %v4400_v60  ;;  %2401 = vmatprep.subr.bf16.mxu0 %v4033_v57  ;;  %v4057_v57 = vld [vmem:[#allocation5 + $0x94] ss:$8 sps:$4 sm:$0xff]  }
  0x76   :  { %1093 = vmatpush1.bf16.msra.mxu1 %v3500_v63  ;;  %1027 = vmatprep.mubr.bf16.mxu1 %v4405_v0  ;;  %v4448_v63 = vld [vmem:[%s5036_s0 + $0x50] ss:$8 sps:$4 sm:$0xff]  }
  0x77   :  { %1094 = vmatprep.subr.bf16.mxu1 %v3509_v1  ;;  %v3565_v1 = vcombine.high %v166_v53, %v170_v54  ;;  %v3497_v53 = vcombine.high %v96_v45, %v100_v47  ;;  %v104_v54 = vld [vmem:[#allocation3 + $0x98] sm:$0xff] }
  0x78   :  { %2402 = vmatpush1.bf16.msra.mxu0 %v4031_v62  ;;  %v116_v62 = vld [vmem:[#allocation3 + $0xf8] sm:$0xff] }
  0x79   :  { %2403 = vmatprep.subr.bf16.mxu0 %v4036_v2  ;;  %1244 = vmatmul.mubr.bf16.gmra.mrb[4].mxu0 %v4400_v60  ;;  %v4060_v2 = vld [vmem:[#allocation5 + $0xa4] ss:$8 sps:$4 sm:$0xff]  }
  0x7a   :  { %1095 = vmatpush1.bf16.msra.mxu1 %v3508_v8  ;;  %v3573_v8 = vcombine.high %v174_v59, %v178_v61  ;;  %1253 = vmatprep.mubr.bf16.mxu0 %v4405_v0  ;;  %v3505_v59 = vcombine.high %v104_v54, %v108_v55  ;;  %v112_v61 = vld [vmem:[#allocation3 + $0xd8] sm:$0xff] }
  0x7b   :  { %1096 = vmatprep.subr.bf16.mxu1 %v3517_v12  ;;  %v190_v12 = vld [vmem:[#allocation3 + $0x348] sm:$0xff]  ;;  %v3513_v5 = vcombine.high %v112_v61, %v116_v62 }
  0x7c   :  { %2404 = vmatpush1.bf16.msra.mxu0 %v4034_v7  ;;  %v3589_v24 = vcombine.high %v190_v12, %v194_v13  ;;  %v124_v7 = vld [vmem:[#allocation3 + $0x138] sm:$0xff] }
  0x7d   :  { %1028 = vmatmul.mubr.bf16.gmra.mrb[8].mxu1 %v4412_v11  ;;  %2405 = vmatprep.subr.bf16.mxu0 %v4039_v9  ;;  %v4063_v9 = vld [vmem:[#allocation5 + $0xb4] ss:$8 sps:$4 sm:$0xff]  }
  0x7e   :  { %1097 = vmatpush1.bf16.msra.mxu1 %v3516_v18  ;;  %1037 = vmatprep.mubr.bf16.mxu1 %v4417_v16  ;;  %v4042_v18 = vld [vmem:[#allocation5 + $0x44] ss:$8 sps:$4 sm:$0xff]  }
  0x7f   :  { %1098 = vmatprep.subr.bf16.mxu1 %v3525_v21  ;;  %v198_v21 = vld [vmem:[#allocation3 + $0x388] sm:$0xff] }
  0x80   :  { %2406 = vmatpush1.bf16.msra.mxu0 %v4037_v14  ;;  %v3597_v31 = vcombine.high %v198_v21, %v202_v22  ;;  %v3596_v35 = vcombine.low %v198_v21, %v202_v22  ;;  %v132_v14 = vld [vmem:[#allocation3 + $0x178] sm:$0xff] }
  0x81   :  { %2407 = vmatprep.subr.bf16.mxu0 %v4042_v18  ;;  %1254 = vmatmul.mubr.bf16.gmra.mrb[8].mxu0 %v4412_v11  ;;  %v4066_v18 = vld [vmem:[#allocation5 + $0xc4] ss:$8 sps:$4 sm:$0xff]   ;;  %v136_v22 = vld [vmem:[#allocation3 + $0x198] sm:$0xff] }
  0x82   :  { %1099 = vmatpush1.bf16.msra.mxu1 %v3524_v26  ;;  %v3588_v26 = vcombine.low %v190_v12, %v194_v13  ;;  %1263 = vmatprep.mubr.bf16.mxu0 %v4417_v16  ;;  %v3521_v12 = vcombine.high %v120_v6, %v124_v7  ;;  %v128_v13 = vld [vmem:[#allocation3 + $0x158] sm:$0xff] }
  0x83   :  { %1100 = vmatprep.subr.bf16.mxu1 %v3533_v30  ;;  %v4043_v30 = vld [vmem:[#allocation5 + $0x50] ss:$8 sps:$4 sm:$0xff]   ;;  %v3529_v21 = vcombine.high %v128_v13, %v132_v14 }
  0x84   :  { %2408 = vmatpush1.bf16.msra.mxu0 %v4040_v23  ;;  %v140_v23 = vld [vmem:[#allocation3 + $0x1b8] sm:$0xff] }
  0x85   :  { %1038 = vmatmul.mubr.bf16.gmra.mrb[12].mxu1 %v4424_v29  ;;  %2409 = vmatprep.subr.bf16.mxu0 %v4045_v25  ;;  %v4069_v25 = vld [vmem:[#allocation5 + $0xd4] ss:$8 sps:$4 sm:$0xff]  }
  0x86   :  { %1101 = vmatpush1.bf16.msra.mxu1 %v3532_v36  ;;  %1047 = vmatprep.mubr.bf16.mxu1 %v4429_v34  ;;  %v3605_v36 = vcombine.high %v206_v27, %v210_v28  ;;  %v3537_v27 = vcombine.high %v136_v22, %v140_v23  ;;  %v144_v28 = vld [vmem:[#allocation3 + $0x1d8] sm:$0xff] }
  0x87   :  { %1102 = vmatprep.subr.bf16.mxu1 %v3541_v39  ;;  %v4046_v39 = vld [vmem:[#allocation5 + $0x60] ss:$8 sps:$4 sm:$0xff]  }
  0x88   :  { %2410 = vmatpush1.bf16.msra.mxu0 %v4043_v30  ;;  %v148_v30 = vld [vmem:[#allocation3 + $0x1f8] sm:$0xff] }
  0x89   :  { %2411 = vmatprep.subr.bf16.mxu0 %v4048_v33  ;;  %1264 = vmatmul.mubr.bf16.gmra.mrb[12].mxu0 %v4424_v29  ;;  %v4072_v33 = vld [vmem:[#allocation5 + $0xe4] ss:$8 sps:$4 sm:$0xff]  }
  0x8a   :  { %1103 = vmatpush1.bf16.msra.mxu1 %v3540_v43  ;;  %v4484_v43 = vld [vmem:[%s5036_s0 + $0x4] ss:$8 sps:$4 sm:$0xff]   ;;  %1273 = vmatprep.mubr.bf16.mxu0 %v4429_v34 }
  0x8b   :  { %1104 = vmatprep.subr.bf16.mxu1 %v3549_v49  ;;  %v4049_v49 = vld [vmem:[#allocation5 + $0x70] ss:$8 sps:$4 sm:$0xff]  }
  0x8c   :  { %2412 = vmatpush1.bf16.msra.mxu0 %v4046_v39  ;;  %v4070_v39 = vld [vmem:[#allocation5 + $0xe0] ss:$8 sps:$4 sm:$0xff]  }
  0x8d   :  { %1048 = vmatmul.mubr.bf16.gmra.mrb[16].mxu1 %v4436_v48  ;;  %2413 = vmatprep.subr.bf16.mxu0 %v4051_v40  ;;  %v4075_v40 = vld [vmem:[#allocation5 + $0xf4] ss:$8 sps:$4 sm:$0xff]  }
  0x8e   :  { %1105 = vmatpush1.bf16.msra.mxu1 %v3548_v52  ;;  %1057 = vmatprep.mubr.bf16.mxu1 %v4441_v51  ;;  %v3488_v52 = vcombine.low %v88_v37, %v92_v38  ;;  %v152_v37 = vld [vmem:[#allocation3 + $0x218] sm:$0xff] }
  0x8f   :  { %1106 = vmatprep.subr.bf16.mxu1 %v3557_v56  ;;  %v4052_v56 = vld [vmem:[#allocation5 + $0x80] ss:$8 sps:$4 sm:$0xff]   ;;  %v156_v38 = vld [vmem:[#allocation3 + $0x238] sm:$0xff] }
  0x90   :  { %2414 = vmatpush1.bf16.msra.mxu0 %v4049_v49  ;;  %v4073_v49 = vld [vmem:[#allocation5 + $0xf0] ss:$8 sps:$4 sm:$0xff]  }
  0x91   :  { %2415 = vmatprep.subr.bf16.mxu0 %v4054_v50  ;;  %1274 = vmatmul.mubr.bf16.gmra.mrb[16].mxu0 %v4436_v48  ;;  %v4078_v50 = vld [vmem:[#allocation5 + $0x104] ss:$8 sps:$4 sm:$0xff]  }
  0x92   :  { %1107 = vmatpush1.bf16.msra.mxu1 %v3556_v58  ;;  %v3496_v58 = vcombine.low %v96_v45, %v100_v47  ;;  %1283 = vmatprep.mubr.bf16.mxu0 %v4441_v51  ;;  %v160_v45 = vld [vmem:[#allocation3 + $0x258] sm:$0xff] }
  0x93   :  { %1108 = vmatprep.subr.bf16.mxu1 %v3565_v1  ;;  %v4055_v1 = vld [vmem:[#allocation5 + $0x90] ss:$8 sps:$4 sm:$0xff]  }
  0x94   :  { %2416 = vmatpush1.bf16.msra.mxu0 %v4052_v56  ;;  %v164_v47 = vld [vmem:[#allocation3 + $0x278] sm:$0xff] }
  0x95   :  { %1058 = vmatmul.mubr.bf16.gmra.mrb[20].mxu1 %v4448_v63  ;;  %2417 = vmatprep.subr.bf16.mxu0 %v4057_v57  ;;  %v3560_v56 = vcombine.low %v160_v45, %v164_v47 }
  0x96   :  { %1109 = vmatpush1.bf16.msra.mxu1 %v3564_v4  ;;  %1067 = vmatprep.mubr.bf16.mxu1 %v4454_v3  ;;  %v3504_v4 = vcombine.low %v104_v54, %v108_v55  ;;  %v168_v54 = vld [vmem:[#allocation3 + $0x298] sm:$0xff] }
  0x97   :  { %1110 = vmatprep.subr.bf16.mxu1 %v3573_v8  ;;  %v4058_v8 = vld [vmem:[#allocation5 + $0xa0] ss:$8 sps:$4 sm:$0xff]   ;;  %v172_v55 = vld [vmem:[#allocation3 + $0x2b8] sm:$0xff] }
  0x98   :  { %2418 = vmatpush1.bf16.msra.mxu0 %v4055_v1  ;;  %v3569_v57 = vcombine.high %v168_v54, %v172_v55  ;;  %v184_v1 = vld [vmem:[#allocation3 + $0x318] sm:$0xff] }
  0x99   :  { %2419 = vmatprep.subr.bf16.mxu0 %v4060_v2  ;;  %1284 = vmatmul.mubr.bf16.gmra.mrb[20].mxu0 %v4448_v63  ;;  %v188_v2 = vld [vmem:[#allocation3 + $0x338] sm:$0xff] }
  0x9a   :  { %1111 = vmatpush1.bf16.msra.mxu1 %v3572_v10  ;;  %v3512_v10 = vcombine.low %v112_v61, %v116_v62  ;;  %1293 = vmatprep.mubr.bf16.mxu0 %v4454_v3  ;;  %v3568_v61 = vcombine.low %v168_v54, %v172_v55  ;;  %v4082_v55 = vld [vmem:[#allocation5 + $0x120] ss:$8 sps:$4 sm:$0xff]  }
  0x9b   :  { %1112 = vmatprep.subr.bf16.mxu1 %v3581_v17  ;;  %v4061_v17 = vld [vmem:[#allocation5 + $0xb0] ss:$8 sps:$4 sm:$0xff]  }
  0x9c   :  { %2420 = vmatpush1.bf16.msra.mxu0 %v4058_v8  ;;  %v3584_v8 = vcombine.low %v184_v1, %v188_v2 }
  0x9d   :  { %1068 = vmatmul.mubr.bf16.gmra.mrb[24].mxu1 %v4462_v15  ;;  %2421 = vmatprep.subr.bf16.mxu0 %v4063_v9 }
  0x9e   :  { %1113 = vmatpush1.bf16.msra.mxu1 %v3580_v20  ;;  %1077 = vmatprep.mubr.bf16.mxu1 %v4468_v19  ;;  %v3520_v20 = vcombine.low %v120_v6, %v124_v7  ;;  %v192_v6 = vld [vmem:[#allocation3 + $0x358] sm:$0xff] }
  0x9f   :  { %1114 = vmatprep.subr.bf16.mxu1 %v3589_v24  ;;  %v4064_v24 = vld [vmem:[#allocation5 + $0xc0] ss:$8 sps:$4 sm:$0xff]   ;;  %v196_v7 = vld [vmem:[#allocation3 + $0x378] sm:$0xff] }
  0xa0   :  { %2422 = vmatpush1.bf16.msra.mxu0 %v4061_v17  ;;  %v3593_v9 = vcombine.high %v192_v6, %v196_v7  ;;  %v208_v17 = vld [vmem:[#allocation3 + $0x3d8] sm:$0xff] }
  0xa1   :  { %2423 = vmatprep.subr.bf16.mxu0 %v4066_v18  ;;  %1294 = vmatmul.mubr.bf16.gmra.mrb[24].mxu0 %v4462_v15  ;;  %v212_v18 = vld [vmem:[#allocation3 + $0x3f8] sm:$0xff] }
  0xa2   :  { %1115 = vmatpush1.bf16.msra.mxu1 %v3588_v26  ;;  %v3528_v26 = vcombine.low %v128_v13, %v132_v14  ;;  %1303 = vmatprep.mubr.bf16.mxu0 %v4468_v19  ;;  %v3592_v13 = vcombine.low %v192_v6, %v196_v7  ;;  %v4090_v7 = vld [vmem:[#allocation5 + $0x144] ss:$8 sps:$4 sm:$0xff]  }
  0xa3   :  { %1116 = vmatprep.subr.bf16.mxu1 %v3597_v31  ;;  %v4067_v31 = vld [vmem:[#allocation5 + $0xd0] ss:$8 sps:$4 sm:$0xff]  }
  0xa4   :  { %2424 = vmatpush1.bf16.msra.mxu0 %v4064_v24 }
  0xa5   :  { %1078 = vmatmul.mubr.bf16.gmra.mrb[28].mxu1 %v4478_v32  ;;  %2425 = vmatprep.subr.bf16.mxu0 %v4069_v25 }
  0xa6   :  { %1117 = vmatpush1.bf16.msra.mxu1 %v3596_v35  ;;  %1120 = vmatprep.mubr.bf16.mxu1 %v4484_v43  ;;  %v3536_v35 = vcombine.low %v136_v22, %v140_v23  ;;  %v3608_v22 = vcombine.low %v208_v17, %v212_v18 }
  0xa7   :  { %1118 = vmatprep.subr.bf16.mxu1 %v3605_v36  ;;  %v3545_v36 = vcombine.high %v144_v28, %v148_v30 }
  0xa8   :  { %2426 = vmatpush1.bf16.msra.mxu0 %v4067_v31 }
  0xa9   :  { %2427 = vmatprep.subr.bf16.mxu0 %v4072_v33  ;;  %1304 = vmatmul.mubr.bf16.gmra.mrb[28].mxu0 %v4478_v32 }
  0xaa   :  { %1119 = vmatpush1.bf16.msra.mxu1 %v3604_v41  ;;  %v3544_v41 = vcombine.low %v144_v28, %v148_v30  ;;  %v4076_v30 = vld [vmem:[#allocation5 + $0x100] ss:$8 sps:$4 sm:$0xff]  }
  0xab   :  { %1314 = vmatprep.subr.bf16.mxu1 %v3489_v44  ;;  %v3553_v44 = vcombine.high %v152_v37, %v156_v38 }
  0xac   :  { %2428 = vmatpush1.bf16.msra.mxu0 %v4070_v39 }
  0xad   :  { %1121 = vmatmul.mubr.bf16.vlgmr.msra.gmra.mrb[32].mxu1 %v4388_v42  ;;  %2429 = vmatprep.subr.bf16.mxu0 %v4075_v40 }
  0xae   :  { %1130 = vmatprep.mubr.bf16.mxu1 %v4393_v46  ;;  %1315 = vmatpush1.bf16.msra.mxu1 %v3488_v52  ;;  %v3552_v52 = vcombine.low %v152_v37, %v156_v38 }
  0xaf   :  { %1316 = vmatprep.subr.bf16.mxu1 %v3497_v53  ;;  %v3561_v53 = vcombine.high %v160_v45, %v164_v47  ;;  %v4084_v47 = vld [vmem:[#allocation5 + $0x124] ss:$8 sps:$4 sm:$0xff]  }
  0xb0   :  { %2430 = vmatpush1.bf16.msra.mxu0 %v4073_v49 }
  0xb1   :  { %2512 = vmatprep.subr.bf16.mxu0 %v4078_v50 }
  0xb2   :  { %1317 = vmatpush1.bf16.msra.mxu1 %v3496_v58  ;;  %v176_v58 = vld [vmem:[#allocation3 + $0x2d8] sm:$0xff] }
  0xb3   :  { %1318 = vmatprep.subr.bf16.mxu1 %v3505_v59  ;;  %v180_v59 = vld [vmem:[#allocation3 + $0x2f8] sm:$0xff] }
  0xb4   :  { %v3577_v62 = vcombine.high %v176_v58, %v180_v59 }
  0xb5   :  { %1131 = vmatmul.mubr.bf16.gmra.mrb[36].mxu1 %v4400_v60 }
  0xb6   :  { %1140 = vmatprep.mubr.bf16.mxu1 %v4405_v0  ;;  %1319 = vmatpush1.bf16.msra.mxu1 %v3504_v4  ;;  %v3576_v4 = vcombine.low %v176_v58, %v180_v59  ;;  %v4087_v58 = vld [vmem:[#allocation5 + $0x134] ss:$8 sps:$4 sm:$0xff]  }
  0xb7   :  { %1320 = vmatprep.subr.bf16.mxu1 %v3513_v5  ;;  %v3585_v5 = vcombine.high %v184_v1, %v188_v2 }
  0xba   :  { %1321 = vmatpush1.bf16.msra.mxu1 %v3512_v10  ;;  %v200_v10 = vld [vmem:[#allocation3 + $0x398] sm:$0xff] }
  0xbb   :  { %1322 = vmatprep.subr.bf16.mxu1 %v3521_v12  ;;  %v204_v12 = vld [vmem:[#allocation3 + $0x3b8] sm:$0xff] }
  0xbc   :  { %v3601_v14 = vcombine.high %v200_v10, %v204_v12 }
  0xbd   :  { %1141 = vmatmul.mubr.bf16.gmra.mrb[40].mxu1 %v4412_v11 }
  0xbe   :  { %1150 = vmatprep.mubr.bf16.mxu1 %v4417_v16  ;;  %1323 = vmatpush1.bf16.msra.mxu1 %v3520_v20  ;;  %v3600_v20 = vcombine.low %v200_v10, %v204_v12 }
  0xbf   :  { %1324 = vmatprep.subr.bf16.mxu1 %v3529_v21  ;;  %v3609_v21 = vcombine.high %v208_v17, %v212_v18 }
  0xc2   :  { %1325 = vmatpush1.bf16.msra.mxu1 %v3528_v26 }
  0xc3   :  { %1326 = vmatprep.subr.bf16.mxu1 %v3537_v27 }
  0xc5   :  { %1151 = vmatmul.mubr.bf16.gmra.mrb[44].mxu1 %v4424_v29 }
  0xc6   :  { %1160 = vmatprep.mubr.bf16.mxu1 %v4429_v34  ;;  %1327 = vmatpush1.bf16.msra.mxu1 %v3536_v35  ;;  %v4081_v35 = vld [vmem:[#allocation5 + $0x114] ss:$8 sps:$4 sm:$0xff]  }
  0xc7   :  { %1328 = vmatprep.subr.bf16.mxu1 %v3545_v36 }
  0xca   :  { %1329 = vmatpush1.bf16.msra.mxu1 %v3544_v41  ;;  %v4079_v41 = vld [vmem:[#allocation5 + $0x110] ss:$8 sps:$4 sm:$0xff]  }
  0xcb   :  { %1330 = vmatprep.subr.bf16.mxu1 %v3553_v44 }
  0xcd   :  { %1161 = vmatmul.mubr.bf16.gmra.mrb[48].mxu1 %v4436_v48 }
  0xce   :  { %1170 = vmatprep.mubr.bf16.mxu1 %v4441_v51  ;;  %1331 = vmatpush1.bf16.msra.mxu1 %v3552_v52 }
  0xcf   :  { %1332 = vmatprep.subr.bf16.mxu1 %v3561_v53 }
  0xd2   :  { %1333 = vmatpush1.bf16.msra.mxu1 %v3560_v56 }
  0xd3   :  { %1334 = vmatprep.subr.bf16.mxu1 %v3569_v57 }
  0xd5   :  { %1171 = vmatmul.mubr.bf16.gmra.mrb[52].mxu1 %v4448_v63 }
  0xd6   :  { %1180 = vmatprep.mubr.bf16.mxu1 %v4454_v3  ;;  %1335 = vmatpush1.bf16.msra.mxu1 %v3568_v61 }
  0xd7   :  { %1336 = vmatprep.subr.bf16.mxu1 %v3577_v62 }
  0xda   :  { %1337 = vmatpush1.bf16.msra.mxu1 %v3576_v4  ;;  %v4085_v4 = vld [vmem:[#allocation5 + $0x130] ss:$8 sps:$4 sm:$0xff]  }
  0xdb   :  { %1338 = vmatprep.subr.bf16.mxu1 %v3585_v5 }
  0xdd   :  { %1181 = vmatmul.mubr.bf16.gmra.mrb[56].mxu1 %v4462_v15 }
  0xde   :  { %1190 = vmatprep.mubr.bf16.mxu1 %v4468_v19  ;;  %1339 = vmatpush1.bf16.msra.mxu1 %v3584_v8 }
  0xdf   :  { %1340 = vmatprep.subr.bf16.mxu1 %v3593_v9 }
  0xe2   :  { %1341 = vmatpush1.bf16.msra.mxu1 %v3592_v13 }
  0xe3   :  { %1342 = vmatprep.subr.bf16.mxu1 %v3601_v14  ;;  %v4088_v14 = vld [vmem:[#allocation5 + $0x140] ss:$8 sps:$4 sm:$0xff]  }
  0xe5   :  { %1191 = vmatmul.mubr.bf16.gmra.mrb[60].mxu1 %v4478_v32 }
  0xe6   :  { %1343 = vmatpush1.bf16.msra.mxu1 %v3600_v20  ;;  %1346 = vmatprep.mubr.bf16.mxu1 %v4484_v43  ;;  %v4093_v20 = vld [vmem:[#allocation5 + $0x154] ss:$8 sps:$4 sm:$0xff]  }
  0xe7   :  { %1344 = vmatprep.subr.bf16.mxu1 %v3609_v21 }
  0xea   :  { %1345 = vmatpush1.bf16.msra.mxu1 %v3608_v22 }
  0xed   :  { %1347 = vmatmul.mubr.bf16.vlgmr.msra.gmra.mrb[64].mxu1 %v4388_v42  ;;  %v215_v42 = vlaneseq }
  0xee   :  { %1356 = vmatprep.mubr.bf16.mxu1 %v4393_v46 }
  0xef   :  { %v4527_v46 = vshrl.u32 %v215_v42, 7 }
  0xf5   :  { %1357 = vmatmul.mubr.bf16.gmra.mrb[68].mxu1 %v4400_v60  ;;  %v217_v60 = vsub.s32 0, %v4527_v46 }
  0xf6   :  { %1366 = vmatprep.mubr.bf16.mxu1 %v4405_v0  ;;  %v4533_v0 = vld [vmem:[%s5038_s2] sm:$0xff] }
  0xfd   :  { %1367 = vmatmul.mubr.bf16.gmra.mrb[72].mxu1 %v4412_v11  ;;  %v221_v11 = vsub.s32 1, %v4527_v46 }
  0xfe   :  { %1376 = vmatprep.mubr.bf16.mxu1 %v4417_v16  ;;  %v4539_v16 = vrot.slane %v4533_v0, %v217_v60 }
 0x105   :  { %1377 = vmatmul.mubr.bf16.gmra.mrb[76].mxu1 %v4424_v29  ;;  %v4544_v29 = vrot.slane %v4533_v0, %v221_v11 }
 0x106   :  { %1386 = vmatprep.mubr.bf16.mxu1 %v4429_v34 }
 0x10d   :  { %1387 = vmatmul.mubr.bf16.gmra.mrb[80].mxu1 %v4436_v48 }
 0x10e   :  { %1396 = vmatprep.mubr.bf16.mxu1 %v4441_v51 }
 0x115   :  { %1397 = vmatmul.mubr.bf16.gmra.mrb[84].mxu1 %v4448_v63 }
 0x116   :  { %1406 = vmatprep.mubr.bf16.mxu1 %v4454_v3 }
 0x11d   :  { %1407 = vmatmul.mubr.bf16.gmra.mrb[88].mxu1 %v4462_v15 }
 0x11e   :  { %1416 = vmatprep.mubr.bf16.mxu1 %v4468_v19 }
 0x125   :  { %1417 = vmatmul.mubr.bf16.gmra.mrb[92].mxu1 %v4478_v32 }
 0x140   :  { %v1009_v34 = vpop.f32.mrb[0].mxu1 }
 0x141   :  { %v1010_v48 = vadd.f32 %v1009_v34, %v4539_v16  ;;  %v1011_v51 = vpop.f32.mrb[1].mxu1 }
 0x142   :  { %v1012_v63 = vadd.f32 %v1011_v51, %v4544_v29  ;;  %v1013_v3 = vpop.f32.mrb[2].mxu1 }
 0x143   :  { %v1014_v15 = vadd.f32 %v1013_v3, %v4539_v16  ;;  %v1015_v19 = vpop.f32.mrb[3].mxu1  ;;  %v1427_v43 = vmax.f32 %v1010_v48, 0.0  ;;  %v233_v48 = vsub.s32 4, %v4527_v46  ;;  %v237_v3 = vsub.s32 5, %v4527_v46 }
 0x144   :  { %v1016_v32 = vadd.f32 %v1015_v19, %v4544_v29  ;;  %v1428_v24 = vmax.f32 %v1012_v63, 0.0  ;;  %v4091_v63 = vld [vmem:[#allocation5 + $0x150] ss:$8 sps:$4 sm:$0xff]  }
 0x145   :  { %v1435_v23 = vmax.f32 %v1014_v15, 0.0 }
 0x146   :  { %v1436_v25 = vmax.f32 %v1016_v32, 0.0  ;;  %v4096_v32 = vld [vmem:[#allocation5 + $0x164] ss:$8 sps:$4 sm:$0xff]  }
 0x147   :  { %v1555_v26 = vpack.c.bf16 %v1435_v23, %v1427_v43 }
 0x148   :  { %v1556_v27 = vpack.c.bf16 %v1436_v25, %v1428_v24  ;;  %v1019_v28 = vpop.f32.mrb[4].mxu1  ;;  %v4565_v25 = vrot.slane %v4533_v0, %v233_v48  ;;  %v4103_v48 = vld [vmem:[#allocation5 + $0x190] ss:$8 sps:$4 sm:$0xff]  }
 0x149   :  { %v1020_v31 = vadd.f32 %v1019_v28, %v4539_v16  ;;  %v1021_v33 = vpop.f32.mrb[5].mxu1  ;;  %v4094_v28 = vld [vmem:[#allocation5 + $0x160] ss:$8 sps:$4 sm:$0xff]  }
 0x14a   :  { %v1022_v36 = vadd.f32 %v1021_v33, %v4544_v29  ;;  %v1023_v37 = vpop.f32.mrb[6].mxu1  ;;  %2431 = vmatprep.mubr.bf16.mxu0 %v1556_v27 }
 0x14b   :  { %v1024_v38 = vadd.f32 %v1023_v37, %v4539_v16  ;;  %v1025_v39 = vpop.f32.mrb[7].mxu1  ;;  %2432 = vmatmul.mubr.bf16.vlgmr.msra.gmra.mrb[32].mxu0 %v1555_v26  ;;  %v1443_v44 = vmax.f32 %v1020_v31, 0.0 }
 0x14c   :  { %v1026_v40 = vadd.f32 %v1025_v39, %v4544_v29  ;;  %2513 = vmatpush1.bf16.msra.mxu0 %v4076_v30  ;;  %v1444_v49 = vmax.f32 %v1022_v36, 0.0  ;;  %v4568_v30 = vrot.slane %v4533_v0, %v237_v3 }
 0x14d   :  { %v1451_v45 = vmax.f32 %v1024_v38, 0.0  ;;  %2514 = vmatprep.subr.bf16.mxu0 %v4081_v35  ;;  %v4099_v35 = vld [vmem:[#allocation5 + $0x174] ss:$8 sps:$4 sm:$0xff]   ;;  %v1235_v38 = vpop.f32.mrb[0].mxu0 }
 0x14e   :  { %v1452_v50 = vmax.f32 %v1026_v40, 0.0 }
 0x14f   :  { %v1563_v52 = vpack.c.bf16 %v1451_v45, %v1443_v44  ;;  %v1237_v44 = vpop.f32.mrb[1].mxu0 }
 0x150   :  { %v1564_v53 = vpack.c.bf16 %v1452_v50, %v1444_v49  ;;  %v1029_v54 = vpop.f32.mrb[8].mxu1  ;;  %2515 = vmatpush1.bf16.msra.mxu0 %v4079_v41  ;;  %v1236_v41 = vadd.f32 %v1235_v38, %v4565_v25  ;;  %v1238_v49 = vadd.f32 %v1237_v44, %v4568_v30  ;;  %v1239_v50 = vpop.f32.mrb[2].mxu0 }
 0x151   :  { %v1030_v56 = vadd.f32 %v1029_v54, %v4539_v16  ;;  %v1031_v57 = vpop.f32.mrb[9].mxu1  ;;  %2516 = vmatprep.subr.bf16.mxu0 %v4084_v47  ;;  %v4097_v47 = vld [vmem:[#allocation5 + $0x170] ss:$8 sps:$4 sm:$0xff]   ;;  %v4102_v54 = vld [vmem:[#allocation5 + $0x184] ss:$8 sps:$4 sm:$0xff]  }
 0x152   :  { %v1032_v59 = vadd.f32 %v1031_v57, %v4544_v29  ;;  %v1033_v61 = vpop.f32.mrb[10].mxu1  ;;  %2441 = vmatprep.mubr.bf16.mxu0 %v1564_v53  ;;  %v1241_v57 = vpop.f32.mrb[3].mxu0 }
 0x153   :  { %v1034_v62 = vadd.f32 %v1033_v61, %v4539_v16  ;;  %v1035_v1 = vpop.f32.mrb[11].mxu1  ;;  %2442 = vmatmul.mubr.bf16.gmra.mrb[36].mxu0 %v1563_v52  ;;  %v1459_v5 = vmax.f32 %v1030_v56, 0.0  ;;  %v1240_v56 = vadd.f32 %v1239_v50, %v4565_v25  ;;  %v1432_v61 = vmax.f32 %v1238_v49, 0.0 }
 0x154   :  { %v1036_v2 = vadd.f32 %v1035_v1, %v4544_v29  ;;  %2517 = vmatpush1.bf16.msra.mxu0 %v4082_v55  ;;  %v1460_v8 = vmax.f32 %v1032_v59, 0.0  ;;  %v1431_v55 = vmax.f32 %v1236_v41, 0.0  ;;  %v4111_v41 = vld [vmem:[#allocation5 + $0x1b4] ss:$8 sps:$4 sm:$0xff]  }
 0x155   :  { %v1467_v6 = vmax.f32 %v1034_v62, 0.0  ;;  %2518 = vmatprep.subr.bf16.mxu0 %v4087_v58  ;;  %v1242_v62 = vadd.f32 %v1241_v57, %v4568_v30  ;;  %v4109_v57 = vld [vmem:[#allocation5 + $0x1b0] ss:$8 sps:$4 sm:$0xff]  }
 0x156   :  { %v1468_v9 = vmax.f32 %v1036_v2, 0.0  ;;  %v1439_v2 = vmax.f32 %v1240_v56, 0.0 }
 0x157   :  { %v1571_v10 = vpack.c.bf16 %v1467_v6, %v1459_v5  ;;  %v4100_v6 = vld [vmem:[#allocation5 + $0x180] ss:$8 sps:$4 sm:$0xff]  }
 0x158   :  { %v1572_v12 = vpack.c.bf16 %v1468_v9, %v1460_v8  ;;  %v1039_v13 = vpop.f32.mrb[12].mxu1  ;;  %2519 = vmatpush1.bf16.msra.mxu0 %v4085_v4 }
 0x159   :  { %v1040_v17 = vadd.f32 %v1039_v13, %v4539_v16  ;;  %v1041_v18 = vpop.f32.mrb[13].mxu1  ;;  %2520 = vmatprep.subr.bf16.mxu0 %v4090_v7  ;;  %v1440_v7 = vmax.f32 %v1242_v62, 0.0 }
 0x15a   :  { %v1042_v21 = vadd.f32 %v1041_v18, %v4544_v29  ;;  %v1043_v22 = vpop.f32.mrb[14].mxu1  ;;  %2451 = vmatprep.mubr.bf16.mxu0 %v1572_v12  ;;  %v4579_v12 = vpack.c.bf16 %v1439_v2, %v1431_v55  ;;  %v1245_v18 = vpop.f32.mrb[4].mxu0 }
 0x15b   :  { %v1044_v42 = vadd.f32 %v1043_v22, %v4539_v16  ;;  %v1045_v34 = vpop.f32.mrb[15].mxu1  ;;  %2452 = vmatmul.mubr.bf16.gmra.mrb[40].mxu0 %v1571_v10  ;;  %v1475_v15 = vmax.f32 %v1040_v17, 0.0  ;;  %v4105_v10 = vld [vmem:[#allocation5 + $0x194] ss:$8 sps:$4 sm:$0xff]   ;;  %v4582_v17 = vpack.c.bf16 %v1440_v7, %v1432_v61  ;;  %v1246_v22 = vadd.f32 %v1245_v18, %v4565_v25 }
 0x15c   :  { %v1046_v51 = vadd.f32 %v1045_v34, %v4544_v29  ;;  %2521 = vmatpush1.bf16.msra.mxu0 %v4088_v14  ;;  %v1476_v43 = vmax.f32 %v1042_v21, 0.0 }
 0x15d   :  { %v1483_v19 = vmax.f32 %v1044_v42, 0.0  ;;  %2522 = vmatprep.subr.bf16.mxu0 %v4093_v20  ;;  %v1247_v42 = vpop.f32.mrb[5].mxu0 }
 0x15e   :  { %v1484_v23 = vmax.f32 %v1046_v51, 0.0  ;;  %v1248_v51 = vadd.f32 %v1247_v42, %v4568_v30 }
 0x15f   :  { %v1579_v24 = vpack.c.bf16 %v1483_v19, %v1475_v15  ;;  %v4108_v19 = vld [vmem:[#allocation5 + $0x1a4] ss:$8 sps:$4 sm:$0xff]  }
 0x160   :  { %v1580_v26 = vpack.c.bf16 %v1484_v23, %v1476_v43  ;;  %v1049_v27 = vpop.f32.mrb[16].mxu1  ;;  %2523 = vmatpush1.bf16.msra.mxu0 %v4091_v63  ;;  %v1249_v63 = vpop.f32.mrb[6].mxu0 }
 0x161   :  { %v1050_v31 = vadd.f32 %v1049_v27, %v4539_v16  ;;  %v1051_v33 = vpop.f32.mrb[17].mxu1  ;;  %2524 = vmatprep.subr.bf16.mxu0 %v4096_v32  ;;  %v1447_v32 = vmax.f32 %v1246_v22, 0.0  ;;  %v1250_v43 = vadd.f32 %v1249_v63, %v4565_v25  ;;  %v1251_v23 = vpop.f32.mrb[7].mxu0  ;;  %v1448_v27 = vmax.f32 %v1248_v51, 0.0  ;;  %v4117_v51 = vld [vmem:[#allocation5 + $0x1d4] ss:$8 sps:$4 sm:$0xff]  }
 0x162   :  { %v1052_v36 = vadd.f32 %v1051_v33, %v4544_v29  ;;  %v1053_v37 = vpop.f32.mrb[18].mxu1  ;;  %2461 = vmatprep.mubr.bf16.mxu0 %v1580_v26  ;;  %v1255_v50 = vpop.f32.mrb[8].mxu0  ;;  %v229_v22 = vsub.s32 3, %v4527_v46 }
 0x163   :  { %v1054_v39 = vadd.f32 %v1053_v37, %v4539_v16  ;;  %v1055_v40 = vpop.f32.mrb[19].mxu1  ;;  %2462 = vmatmul.mubr.bf16.gmra.mrb[44].mxu0 %v1579_v24  ;;  %v1491_v52 = vmax.f32 %v1050_v31, 0.0  ;;  %v1455_v33 = vmax.f32 %v1250_v43, 0.0  ;;  %v4106_v37 = vld [vmem:[#allocation5 + $0x1a0] ss:$8 sps:$4 sm:$0xff]   ;;  %v1257_v55 = vpop.f32.mrb[9].mxu0 }
 0x164   :  { %v1056_v45 = vadd.f32 %v1055_v40, %v4544_v29  ;;  %2525 = vmatpush1.bf16.msra.mxu0 %v4094_v28  ;;  %v1492_v58 = vmax.f32 %v1052_v36, 0.0  ;;  %v1252_v28 = vadd.f32 %v1251_v23, %v4568_v30 }
 0x165   :  { %v1499_v53 = vmax.f32 %v1054_v39, 0.0  ;;  %2526 = vmatprep.subr.bf16.mxu0 %v4099_v35  ;;  %v4591_v44 = vpack.c.bf16 %v1455_v33, %v1447_v32  ;;  %v4617_v33 = vrot.slane %v4533_v0, %v229_v22  ;;  %v4126_v22 = vld [vmem:[#allocation5 + $0x204] ss:$8 sps:$4 sm:$0xff]  }
 0x166   :  { %v1500_v59 = vmax.f32 %v1056_v45, 0.0  ;;  %v1456_v38 = vmax.f32 %v1252_v28, 0.0  ;;  %v4115_v28 = vld [vmem:[#allocation5 + $0x1d0] ss:$8 sps:$4 sm:$0xff]  }
 0x167   :  { %v1587_v1 = vpack.c.bf16 %v1499_v53, %v1491_v52 }
 0x168   :  { %v1588_v4 = vpack.c.bf16 %v1500_v59, %v1492_v58  ;;  %v1059_v5 = vpop.f32.mrb[20].mxu1  ;;  %2527 = vmatpush1.bf16.msra.mxu0 %v4097_v47  ;;  %v4594_v49 = vpack.c.bf16 %v1456_v38, %v1448_v27  ;;  %v1258_v58 = vadd.f32 %v1257_v55, %v4568_v30  ;;  %v1259_v59 = vpop.f32.mrb[10].mxu0  ;;  %v4120_v38 = vld [vmem:[#allocation5 + $0x1e4] ss:$8 sps:$4 sm:$0xff]  }
 0x169   :  { %v1060_v8 = vadd.f32 %v1059_v5, %v4539_v16  ;;  %v1061_v9 = vpop.f32.mrb[21].mxu1  ;;  %2528 = vmatprep.subr.bf16.mxu0 %v4102_v54  ;;  %v1256_v54 = vadd.f32 %v1255_v50, %v4565_v25  ;;  %v1261_v5 = vpop.f32.mrb[11].mxu0 }
 0x16a   :  { %v1062_v13 = vadd.f32 %v1061_v9, %v4544_v29  ;;  %v1063_v14 = vpop.f32.mrb[22].mxu1  ;;  %2471 = vmatprep.mubr.bf16.mxu0 %v1588_v4  ;;  %v1260_v4 = vadd.f32 %v1259_v59, %v4565_v25  ;;  %v1262_v9 = vadd.f32 %v1261_v5, %v4568_v30  ;;  %v1265_v32 = vpop.f32.mrb[12].mxu0 }
 0x16b   :  { %v1064_v20 = vadd.f32 %v1063_v14, %v4539_v16  ;;  %v1065_v21 = vpop.f32.mrb[23].mxu1  ;;  %2472 = vmatmul.mubr.bf16.gmra.mrb[48].mxu0 %v1587_v1  ;;  %v1507_v3 = vmax.f32 %v1060_v8, 0.0  ;;  %v4114_v1 = vld [vmem:[#allocation5 + $0x1c4] ss:$8 sps:$4 sm:$0xff]   ;;  %v1463_v2 = vmax.f32 %v1256_v54, 0.0  ;;  %v1464_v8 = vmax.f32 %v1258_v58, 0.0 }
 0x16c   :  { %v1066_v34 = vadd.f32 %v1065_v21, %v4544_v29  ;;  %2529 = vmatpush1.bf16.msra.mxu0 %v4100_v6  ;;  %v1508_v24 = vmax.f32 %v1062_v13, 0.0  ;;  %v1471_v13 = vmax.f32 %v1260_v4, 0.0  ;;  %v225_v21 = vsub.s32 2, %v4527_v46 }
 0x16d   :  { %v1515_v15 = vmax.f32 %v1064_v20, 0.0  ;;  %2530 = vmatprep.subr.bf16.mxu0 %v4105_v10  ;;  %v4112_v20 = vld [vmem:[#allocation5 + $0x1c0] ss:$8 sps:$4 sm:$0xff]   ;;  %v1472_v42 = vmax.f32 %v1262_v9, 0.0 }
 0x16e   :  { %v1516_v26 = vmax.f32 %v1066_v34, 0.0  ;;  %v4605_v63 = vpack.c.bf16 %v1471_v13, %v1463_v2  ;;  %v4121_v13 = vld [vmem:[#allocation5 + $0x1f0] ss:$8 sps:$4 sm:$0xff]  }
 0x16f   :  { %v1595_v31 = vpack.c.bf16 %v1515_v15, %v1507_v3 }
 0x170   :  { %v1596_v35 = vpack.c.bf16 %v1516_v26, %v1508_v24  ;;  %v1069_v36 = vpop.f32.mrb[24].mxu1  ;;  %2531 = vmatpush1.bf16.msra.mxu0 %v4103_v48  ;;  %v1266_v24 = vadd.f32 %v1265_v32, %v4565_v25  ;;  %v1267_v26 = vpop.f32.mrb[13].mxu0 }
 0x171   :  { %v1070_v39 = vadd.f32 %v1069_v36, %v4539_v16  ;;  %v1071_v40 = vpop.f32.mrb[25].mxu1  ;;  %2532 = vmatprep.subr.bf16.mxu0 %v4108_v19  ;;  %v4608_v19 = vpack.c.bf16 %v1472_v42, %v1464_v8  ;;  %v1269_v36 = vpop.f32.mrb[14].mxu0 }
 0x172   :  { %v1072_v45 = vadd.f32 %v1071_v40, %v4544_v29  ;;  %v1073_v47 = vpop.f32.mrb[26].mxu1  ;;  %2481 = vmatprep.mubr.bf16.mxu0 %v1596_v35  ;;  %v1268_v35 = vadd.f32 %v1267_v26, %v4568_v30  ;;  %v1270_v40 = vadd.f32 %v1269_v36, %v4565_v25 }
 0x173   :  { %v1074_v52 = vadd.f32 %v1073_v47, %v4539_v16  ;;  %v1075_v53 = vpop.f32.mrb[27].mxu1  ;;  %2482 = vmatmul.mubr.bf16.gmra.mrb[52].mxu0 %v1595_v31  ;;  %v1523_v61 = vmax.f32 %v1070_v39, 0.0  ;;  %v4614_v31 = vrot.slane %v4533_v0, %v225_v21  ;;  %v1479_v39 = vmax.f32 %v1266_v24, 0.0 }
 0x174   :  { %v1076_v56 = vadd.f32 %v1075_v53, %v4544_v29  ;;  %2533 = vmatpush1.bf16.msra.mxu0 %v4106_v37  ;;  %v1524_v6 = vmax.f32 %v1072_v45, 0.0  ;;  %v1480_v47 = vmax.f32 %v1268_v35, 0.0  ;;  %v1487_v53 = vmax.f32 %v1270_v40, 0.0 }
 0x175   :  { %v1531_v62 = vmax.f32 %v1074_v52, 0.0  ;;  %2534 = vmatprep.subr.bf16.mxu0 %v4111_v41  ;;  %v1271_v41 = vpop.f32.mrb[15].mxu0 }
 0x176   :  { %v1532_v7 = vmax.f32 %v1076_v56, 0.0  ;;  %v1272_v50 = vadd.f32 %v1271_v41, %v4568_v30  ;;  %v4118_v56 = vld [vmem:[#allocation5 + $0x1e0] ss:$8 sps:$4 sm:$0xff]   ;;  %v1275_v5 = vpop.f32.mrb[16].mxu0 }
 0x177   :  { %v1603_v10 = vpack.c.bf16 %v1531_v62, %v1523_v61  ;;  %v4123_v61 = vld [vmem:[#allocation5 + $0x1f4] ss:$8 sps:$4 sm:$0xff]   ;;  %v4623_v62 = vpack.c.bf16 %v1487_v53, %v1479_v39  ;;  %v1276_v8 = vadd.f32 %v1275_v5, %v4565_v25  ;;  %v1277_v9 = vpop.f32.mrb[17].mxu0  ;;  %v4127_v53 = vld [vmem:[#allocation5 + $0x210] ss:$8 sps:$4 sm:$0xff]  }
 0x178   :  { %v1604_v14 = vpack.c.bf16 %v1532_v7, %v1524_v6  ;;  %v1079_v18 = vpop.f32.mrb[28].mxu1  ;;  %2535 = vmatpush1.bf16.msra.mxu0 %v4109_v57  ;;  %v1488_v57 = vmax.f32 %v1272_v50, 0.0 }
 0x179   :  { %v1080_v34 = vadd.f32 %v1079_v18, %v4539_v16  ;;  %v1081_v48 = vpop.f32.mrb[29].mxu1  ;;  %2536 = vmatprep.subr.bf16.mxu0 %v4114_v1  ;;  %v1279_v18 = vpop.f32.mrb[18].mxu0  ;;  %v1495_v42 = vmax.f32 %v1276_v8, 0.0 }
 0x17a   :  { %v1082_v3 = vadd.f32 %v1081_v48, %v4544_v29  ;;  %v1083_v15 = vpop.f32.mrb[30].mxu1  ;;  %2491 = vmatprep.mubr.bf16.mxu0 %v1604_v14  ;;  %v4626_v4 = vpack.c.bf16 %v1488_v57, %v1480_v47  ;;  %v1278_v14 = vadd.f32 %v1277_v9, %v4568_v30  ;;  %v1281_v48 = vpop.f32.mrb[19].mxu0 }
 0x17b   :  { %v1084_v43 = vadd.f32 %v1083_v15, %v4539_v16  ;;  %v1085_v23 = vpop.f32.mrb[31].mxu1  ;;  %2492 = vmatmul.mubr.bf16.gmra.mrb[56].mxu0 %v1603_v10  ;;  %v1539_v37 = vmax.f32 %v1080_v34, 0.0  ;;  %v1280_v34 = vadd.f32 %v1279_v18, %v4565_v25  ;;  %v1282_v32 = vadd.f32 %v1281_v48, %v4568_v30  ;;  %v1285_v41 = vpop.f32.mrb[20].mxu0 }
 0x17c   :  { %v1086_v27 = vadd.f32 %v1085_v23, %v4544_v29  ;;  %2537 = vmatpush1.bf16.msra.mxu0 %v4112_v20  ;;  %v1540_v29 = vmax.f32 %v1082_v3, 0.0  ;;  %v1496_v15 = vmax.f32 %v1278_v14, 0.0  ;;  %v1286_v47 = vadd.f32 %v1285_v41, %v4565_v25  ;;  %v1287_v50 = vpop.f32.mrb[21].mxu0  ;;  %v4130_v14 = vld [vmem:[#allocation5 + $0x220] ss:$8 sps:$4 sm:$0xff]  }
 0x17d   :  { %v1547_v16 = vmax.f32 %v1084_v43, 0.0  ;;  %2538 = vmatprep.subr.bf16.mxu0 %v4117_v51  ;;  %v1503_v23 = vmax.f32 %v1280_v34, 0.0 }
 0x17e   :  { %v1548_v45 = vmax.f32 %v1086_v27, 0.0  ;;  %v4124_v27 = vld [vmem:[#allocation5 + $0x200] ss:$8 sps:$4 sm:$0xff]  }
 0x17f   :  { %v1611_v52 = vpack.c.bf16 %v1547_v16, %v1539_v37  ;;  %v4129_v37 = vld [vmem:[#allocation5 + $0x214] ss:$8 sps:$4 sm:$0xff]   ;;  %v4635_v16 = vpack.c.bf16 %v1503_v23, %v1495_v42 }
 0x180   :  { %v1612_v54 = vpack.c.bf16 %v1548_v45, %v1540_v29  ;;  %v1122_v55 = vpop.f32.mrb[32].mxu1  ;;  %2539 = vmatpush1.bf16.msra.mxu0 %v4115_v28  ;;  %v1504_v28 = vmax.f32 %v1282_v32, 0.0 }
 0x181   :  { %v1123_v58 = vadd.f32 %v1122_v55, %v4614_v31  ;;  %v1124_v59 = vpop.f32.mrb[33].mxu1  ;;  %2540 = vmatprep.subr.bf16.mxu0 %v4120_v38  ;;  %v1289_v55 = vpop.f32.mrb[22].mxu0 }
 0x182   :  { %v1125_v1 = vadd.f32 %v1124_v59, %v4617_v33  ;;  %v1126_v2 = vpop.f32.mrb[34].mxu1  ;;  %2501 = vmatprep.mubr.bf16.mxu0 %v1612_v54  ;;  %v4638_v40 = vpack.c.bf16 %v1504_v28, %v1496_v15  ;;  %v1288_v54 = vadd.f32 %v1287_v50, %v4568_v30  ;;  %v1511_v59 = vmax.f32 %v1286_v47, 0.0 }
 0x183   :  { %v1127_v6 = vadd.f32 %v1126_v2, %v4614_v31  ;;  %v1128_v7 = vpop.f32.mrb[35].mxu1  ;;  %2502 = vmatmul.mubr.bf16.gmra.mrb[60].mxu0 %v1611_v52  ;;  %v1429_v20 = vmax.f32 %v1123_v58, 0.0  ;;  %v4132_v58 = vld [vmem:[#allocation5 + $0x224] ss:$8 sps:$4 sm:$0xff]  }
 0x184   :  { %v1129_v10 = vadd.f32 %v1128_v7, %v4617_v33  ;;  %2541 = vmatpush1.bf16.msra.mxu0 %v4118_v56  ;;  %v1430_v51 = vmax.f32 %v1125_v1, 0.0  ;;  %v1291_v1 = vpop.f32.mrb[23].mxu0 }
 0x185   :  { %v1437_v21 = vmax.f32 %v1127_v6, 0.0  ;;  %2542 = vmatprep.subr.bf16.mxu0 %v4123_v61  ;;  %v1290_v61 = vadd.f32 %v1289_v55, %v4565_v25  ;;  %v1512_v6 = vmax.f32 %v1288_v54, 0.0  ;;  %v1292_v7 = vadd.f32 %v1291_v1, %v4568_v30 }
 0x186   :  { %v1438_v3 = vmax.f32 %v1129_v10, 0.0 }
 0x187   :  { %v1557_v43 = vpack.c.bf16 %v1437_v21, %v1429_v20  ;;  %v1519_v9 = vmax.f32 %v1290_v61, 0.0  ;;  %v1520_v18 = vmax.f32 %v1292_v7, 0.0  ;;  %v4141_v61 = vld [vmem:[#allocation5 + $0x254] ss:$8 sps:$4 sm:$0xff]  }
 0x188   :  { %v1558_v24 = vpack.c.bf16 %v1438_v3, %v1430_v51  ;;  %v1132_v26 = vpop.f32.mrb[36].mxu1  ;;  %2543 = vmatpush1.bf16.msra.mxu0 %v4121_v13  ;;  %v1295_v3 = vpop.f32.mrb[24].mxu0 }
 0x189   :  { %v1133_v35 = vadd.f32 %v1132_v26, %v4614_v31  ;;  %v1134_v36 = vpop.f32.mrb[37].mxu1  ;;  %2625 = vmatprep.subr.bf16.mxu0 %v4126_v22  ;;  %v4135_v22 = vld [vmem:[#allocation5 + $0x234] ss:$8 sps:$4 sm:$0xff]   ;;  %v4647_v42 = vpack.c.bf16 %v1519_v9, %v1511_v59  ;;  %v4650_v51 = vpack.c.bf16 %v1520_v18, %v1512_v6  ;;  %v1297_v23 = vpop.f32.mrb[25].mxu0  ;;  %v4133_v26 = vld [vmem:[#allocation5 + $0x230] ss:$8 sps:$4 sm:$0xff]  }
 0x18a   :  { %v1135_v38 = vadd.f32 %v1134_v36, %v4617_v33  ;;  %v1136_v39 = vpop.f32.mrb[38].mxu1  ;;  %2544 = vmatprep.mubr.bf16.mxu0 %v1558_v24  ;;  %v1299_v28 = vpop.f32.mrb[26].mxu0  ;;  %v4139_v18 = vld [vmem:[#allocation5 + $0x250] ss:$8 sps:$4 sm:$0xff]  }
 0x18b   :  { %v1137_v29 = vadd.f32 %v1136_v39, %v4614_v31  ;;  %v1138_v45 = vpop.f32.mrb[39].mxu1  ;;  %2545 = vmatmul.mubr.bf16.vlgmr.msra.gmra.mrb[32].mxu0 %v1557_v43  ;;  %v1445_v56 = vmax.f32 %v1133_v35, 0.0  ;;  %v1296_v43 = vadd.f32 %v1295_v3, %v4565_v25  ;;  %v1300_v39 = vadd.f32 %v1299_v28, %v4565_v25  ;;  %v1301_v41 = vpop.f32.mrb[27].mxu0 }
 0x18c   :  { %v1139_v52 = vadd.f32 %v1138_v45, %v4617_v33  ;;  %2626 = vmatpush1.bf16.msra.mxu0 %v4124_v27  ;;  %v1446_v2 = vmax.f32 %v1135_v38, 0.0  ;;  %v1298_v27 = vadd.f32 %v1297_v23, %v4568_v30  ;;  %v1302_v50 = vadd.f32 %v1301_v41, %v4568_v30  ;;  %v1305_v7 = vpop.f32.mrb[28].mxu0 }
 0x18d   :  { %v1453_v57 = vmax.f32 %v1137_v29, 0.0  ;;  %2627 = vmatprep.subr.bf16.mxu0 %v4129_v37  ;;  %v4138_v37 = vld [vmem:[#allocation5 + $0x244] ss:$8 sps:$4 sm:$0xff]   ;;  %v1527_v38 = vmax.f32 %v1296_v43, 0.0 }
 0x18e   :  { %v1454_v5 = vmax.f32 %v1139_v52, 0.0  ;;  %v1528_v47 = vmax.f32 %v1298_v27, 0.0 }
 0x18f   :  { %v1565_v8 = vpack.c.bf16 %v1453_v57, %v1445_v56  ;;  %v4136_v56 = vld [vmem:[#allocation5 + $0x240] ss:$8 sps:$4 sm:$0xff]   ;;  %v1536_v57 = vmax.f32 %v1302_v50, 0.0 }
 0x190   :  { %v1566_v10 = vpack.c.bf16 %v1454_v5, %v1446_v2  ;;  %v1142_v13 = vpop.f32.mrb[40].mxu1  ;;  %2628 = vmatpush1.bf16.msra.mxu0 %v4127_v53  ;;  %v1535_v53 = vmax.f32 %v1300_v39, 0.0 }
 0x191   :  { %v1143_v20 = vadd.f32 %v1142_v13, %v4614_v31  ;;  %v1144_v21 = vpop.f32.mrb[41].mxu1  ;;  %2629 = vmatprep.subr.bf16.mxu0 %v4132_v58  ;;  %v4662_v6 = vpack.c.bf16 %v1536_v57, %v1528_v47  ;;  %v1307_v13 = vpop.f32.mrb[29].mxu0  ;;  %v4150_v57 = vld [vmem:[#allocation5 + $0x284] ss:$8 sps:$4 sm:$0xff]  }
 0x192   :  { %v1145_v34 = vadd.f32 %v1144_v21, %v4617_v33  ;;  %v1146_v48 = vpop.f32.mrb[42].mxu1  ;;  %2554 = vmatprep.mubr.bf16.mxu0 %v1566_v10  ;;  %v4659_v1 = vpack.c.bf16 %v1535_v53, %v1527_v38  ;;  %v1306_v10 = vadd.f32 %v1305_v7, %v4565_v25  ;;  %v1309_v21 = vpop.f32.mrb[30].mxu0  ;;  %v4148_v7 = vld [vmem:[#allocation5 + $0x280] ss:$8 sps:$4 sm:$0xff]  }
 0x193   :  { %v1147_v15 = vadd.f32 %v1146_v48, %v4614_v31  ;;  %v1148_v32 = vpop.f32.mrb[43].mxu1  ;;  %2555 = vmatmul.mubr.bf16.gmra.mrb[36].mxu0 %v1565_v8  ;;  %v1461_v35 = vmax.f32 %v1143_v20, 0.0  ;;  %v1308_v20 = vadd.f32 %v1307_v13, %v4568_v30  ;;  %v4144_v48 = vld [vmem:[#allocation5 + $0x264] ss:$8 sps:$4 sm:$0xff]  }
 0x194   :  { %v1149_v24 = vadd.f32 %v1148_v32, %v4617_v33  ;;  %2630 = vmatpush1.bf16.msra.mxu0 %v4130_v14  ;;  %v1462_v29 = vmax.f32 %v1145_v34, 0.0  ;;  %v1543_v3 = vmax.f32 %v1306_v10, 0.0  ;;  %v1311_v32 = vpop.f32.mrb[31].mxu0  ;;  %v4153_v10 = vld [vmem:[#allocation5 + $0x294] ss:$8 sps:$4 sm:$0xff]  }
 0x195   :  { %v1469_v36 = vmax.f32 %v1147_v15, 0.0  ;;  %2631 = vmatprep.subr.bf16.mxu0 %v4135_v22  ;;  %v1310_v15 = vadd.f32 %v1309_v21, %v4565_v25 }
 0x196   :  { %v1470_v45 = vmax.f32 %v1149_v24, 0.0  ;;  %v1544_v24 = vmax.f32 %v1308_v20, 0.0 }
 0x197   :  { %v1573_v52 = vpack.c.bf16 %v1469_v36, %v1461_v35  ;;  %v1551_v28 = vmax.f32 %v1310_v15, 0.0 }
 0x198   :  { %v1574_v54 = vpack.c.bf16 %v1470_v45, %v1462_v29  ;;  %v1152_v55 = vpop.f32.mrb[44].mxu1  ;;  %2632 = vmatpush1.bf16.msra.mxu0 %v4133_v26  ;;  %v1312_v26 = vadd.f32 %v1311_v32, %v4568_v30  ;;  %v4147_v29 = vld [vmem:[#allocation5 + $0x274] ss:$8 sps:$4 sm:$0xff]  }
 0x199   :  { %v1153_v58 = vadd.f32 %v1152_v55, %v4614_v31  ;;  %v1154_v59 = vpop.f32.mrb[45].mxu1  ;;  %2633 = vmatprep.subr.bf16.mxu0 %v4138_v37  ;;  %v4142_v37 = vld [vmem:[#allocation5 + $0x260] ss:$8 sps:$4 sm:$0xff]   ;;  %v4671_v45 = vpack.c.bf16 %v1551_v28, %v1543_v3  ;;  %v4156_v3 = vld [vmem:[#allocation5 + $0x2a4] ss:$8 sps:$4 sm:$0xff]  }
 0x19a   :  { %v1155_v2 = vadd.f32 %v1154_v59, %v4617_v33  ;;  %v1156_v5 = vpop.f32.mrb[46].mxu1  ;;  %2564 = vmatprep.mubr.bf16.mxu0 %v1574_v54  ;;  %v1552_v38 = vmax.f32 %v1312_v26, 0.0  ;;  %v4145_v54 = vld [vmem:[#allocation5 + $0x270] ss:$8 sps:$4 sm:$0xff]   ;;  %v4154_v26 = vld [vmem:[#allocation5 + $0x2a0] ss:$8 sps:$4 sm:$0xff]  }
 0x19b   :  { %v1157_v8 = vadd.f32 %v1156_v5, %v4614_v31  ;;  %v1158_v9 = vpop.f32.mrb[47].mxu1  ;;  %2565 = vmatmul.mubr.bf16.gmra.mrb[40].mxu0 %v1573_v52  ;;  %v1477_v22 = vmax.f32 %v1153_v58, 0.0 }
 0x19c   :  { %v1159_v14 = vadd.f32 %v1158_v9, %v4617_v33  ;;  %2634 = vmatpush1.bf16.msra.mxu0 %v4136_v56  ;;  %v1478_v43 = vmax.f32 %v1155_v2, 0.0  ;;  %v4674_v50 = vpack.c.bf16 %v1552_v38, %v1544_v24 }
 0x19d   :  { %v1485_v34 = vmax.f32 %v1157_v8, 0.0  ;;  %2635 = vmatprep.subr.bf16.mxu0 %v4141_v61 }
 0x19e   :  { %v1486_v23 = vmax.f32 %v1159_v14, 0.0 }
 0x19f   :  { %v1581_v27 = vpack.c.bf16 %v1485_v34, %v1477_v22  ;;  %v4151_v22 = vld [vmem:[#allocation5 + $0x290] ss:$8 sps:$4 sm:$0xff]  }
 0x1a0   :  { %v1582_v35 = vpack.c.bf16 %v1486_v23, %v1478_v43  ;;  %v1162_v36 = vpop.f32.mrb[48].mxu1  ;;  %2636 = vmatpush1.bf16.msra.mxu0 %v4139_v18 }
 0x1a1   :  { %v1163_v39 = vadd.f32 %v1162_v36, %v4614_v31  ;;  %v1164_v41 = vpop.f32.mrb[49].mxu1  ;;  %2637 = vmatprep.subr.bf16.mxu0 %v4144_v48 }
 0x1a2   :  { %v1165_v25 = vadd.f32 %v1164_v41, %v4617_v33  ;;  %v1166_v47 = vpop.f32.mrb[50].mxu1  ;;  %2574 = vmatprep.mubr.bf16.mxu0 %v1582_v35  ;;  %v4159_v35 = vld [vmem:[#allocation5 + $0x2b4] ss:$8 sps:$4 sm:$0xff]  }
 0x1a3   :  { %v1167_v30 = vadd.f32 %v1166_v47, %v4614_v31  ;;  %v1168_v52 = vpop.f32.mrb[51].mxu1  ;;  %2575 = vmatmul.mubr.bf16.gmra.mrb[44].mxu0 %v1581_v27  ;;  %v1493_v55 = vmax.f32 %v1163_v39, 0.0 }
 0x1a4   :  { %v1169_v53 = vadd.f32 %v1168_v52, %v4617_v33  ;;  %2638 = vmatpush1.bf16.msra.mxu0 %v4142_v37  ;;  %v1494_v58 = vmax.f32 %v1165_v25, 0.0 }
 0x1a5   :  { %v1501_v56 = vmax.f32 %v1167_v30, 0.0  ;;  %2639 = vmatprep.subr.bf16.mxu0 %v4147_v29  ;;  %v4157_v29 = vld [vmem:[#allocation5 + $0x2b0] ss:$8 sps:$4 sm:$0xff]   ;;  %v4162_v30 = vld [vmem:[#allocation5 + $0x2c4] ss:$8 sps:$4 sm:$0xff]  }
 0x1a6   :  { %v1502_v59 = vmax.f32 %v1169_v53, 0.0 }
 0x1a7   :  { %v1589_v61 = vpack.c.bf16 %v1501_v56, %v1493_v55 }
 0x1a8   :  { %v1590_v2 = vpack.c.bf16 %v1502_v59, %v1494_v58  ;;  %v1172_v5 = vpop.f32.mrb[52].mxu1  ;;  %2640 = vmatpush1.bf16.msra.mxu0 %v4145_v54 }
 0x1a9   :  { %v1173_v8 = vadd.f32 %v1172_v5, %v4614_v31  ;;  %v1174_v9 = vpop.f32.mrb[53].mxu1  ;;  %2641 = vmatprep.subr.bf16.mxu0 %v4150_v57  ;;  %v4160_v57 = vld [vmem:[#allocation5 + $0x2c0] ss:$8 sps:$4 sm:$0xff]  }
 0x1aa   :  { %v1175_v13 = vadd.f32 %v1174_v9, %v4617_v33  ;;  %v1176_v14 = vpop.f32.mrb[54].mxu1  ;;  %2584 = vmatprep.mubr.bf16.mxu0 %v1590_v2  ;;  %v241_v2 = vsub.s32 6, %v4527_v46 }
 0x1ab   :  { %v1177_v18 = vadd.f32 %v1176_v14, %v4614_v31  ;;  %v1178_v20 = vpop.f32.mrb[55].mxu1  ;;  %2585 = vmatmul.mubr.bf16.gmra.mrb[48].mxu0 %v1589_v61  ;;  %v1509_v34 = vmax.f32 %v1173_v8, 0.0  ;;  %v4165_v61 = vld [vmem:[#allocation5 + $0x2d4] ss:$8 sps:$4 sm:$0xff]   ;;  %v245_v8 = vsub.s32 7, %v4527_v46 }
 0x1ac   :  { %v1179_v21 = vadd.f32 %v1178_v20, %v4617_v33  ;;  %2642 = vmatpush1.bf16.msra.mxu0 %v4148_v7  ;;  %v1510_v15 = vmax.f32 %v1175_v13, 0.0  ;;  %v4163_v14 = vld [vmem:[#allocation5 + $0x2d0] ss:$8 sps:$4 sm:$0xff]  }
 0x1ad   :  { %v1517_v48 = vmax.f32 %v1177_v18, 0.0  ;;  %2643 = vmatprep.subr.bf16.mxu0 %v4153_v10 }
 0x1ae   :  { %v1518_v32 = vmax.f32 %v1179_v21, 0.0  ;;  %v4168_v21 = vld [vmem:[#allocation5 + $0x2e4] ss:$8 sps:$4 sm:$0xff]  }
 0x1af   :  { %v1597_v43 = vpack.c.bf16 %v1517_v48, %v1509_v34 }
 0x1b0   :  { %v1598_v23 = vpack.c.bf16 %v1518_v32, %v1510_v15  ;;  %v1182_v24 = vpop.f32.mrb[56].mxu1  ;;  %2644 = vmatpush1.bf16.msra.mxu0 %v4151_v22  ;;  %v4693_v22 = vrot.slane %v4533_v0, %v241_v2  ;;  %v4166_v32 = vld [vmem:[#allocation5 + $0x2e0] ss:$8 sps:$4 sm:$0xff]  }
 0x1b1   :  { %v1183_v27 = vadd.f32 %v1182_v24, %v4614_v31  ;;  %v1184_v28 = vpop.f32.mrb[57].mxu1  ;;  %2645 = vmatprep.subr.bf16.mxu0 %v4156_v3  ;;  %v4696_v3 = vrot.slane %v4533_v0, %v245_v8 }
 0x1b2   :  { %v1185_v36 = vadd.f32 %v1184_v28, %v4617_v33  ;;  %v1186_v37 = vpop.f32.mrb[58].mxu1  ;;  %2594 = vmatprep.mubr.bf16.mxu0 %v1598_v23 }
 0x1b3   :  { %v1187_v38 = vadd.f32 %v1186_v37, %v4614_v31  ;;  %v1188_v39 = vpop.f32.mrb[59].mxu1  ;;  %2595 = vmatmul.mubr.bf16.gmra.mrb[52].mxu0 %v1597_v43  ;;  %v1525_v25 = vmax.f32 %v1183_v27, 0.0  ;;  %v4221_v37 = vld [vmem:[%s5041_s5] sm:$0xff]  }
 0x1b4   :  { %v1189_v41 = vadd.f32 %v1188_v39, %v4617_v33  ;;  %2646 = vmatpush1.bf16.msra.mxu0 %v4154_v26  ;;  %v1526_v52 = vmax.f32 %v1185_v36, 0.0  ;;  %v4220_v36 = vld [vmem:[%s5041_s5 + $0x40] sm:$0xff]   ;;  %v4169_v39 = vld [vmem:[#allocation5 + $0x2f0] ss:$8 sps:$4 sm:$0xff]  }
 0x1b5   :  { %v1533_v47 = vmax.f32 %v1187_v38, 0.0  ;;  %2647 = vmatprep.subr.bf16.mxu0 %v4159_v35  ;;  %v4222_v38 = vld [vmem:[%s5041_s5 + $0x48] sm:$0xff]   ;;  %3770 = vmatprep.subr.bf16.mxu1 %v4220_v36 }
 0x1b6   :  { %v1534_v53 = vmax.f32 %v1189_v41, 0.0  ;;  %3771 = vmatpush3.bf16.msra.mxu1 %v4221_v37  ;;  %v4230_v36 = vld [vmem:[%s5041_s5 + $0x68] sm:$0xff]   ;;  %v4181_v37 = vld [vmem:[#allocation5 + $0x330] ss:$8 sps:$4 sm:$0xff]  }
 0x1b7   :  { %v1605_v54 = vpack.c.bf16 %v1533_v47, %v1525_v25  ;;  %v4174_v25 = vld [vmem:[#allocation5 + $0x304] ss:$8 sps:$4 sm:$0xff]   ;;  %3772 = vmatprep.subr.bf16.mxu1 %v4222_v38 }
 0x1b8   :  { %v1606_v55 = vpack.c.bf16 %v1534_v53, %v1526_v52  ;;  %v1192_v56 = vpop.f32.mrb[60].mxu1  ;;  %2648 = vmatpush1.bf16.msra.mxu0 %v4157_v29  ;;  %v4223_v52 = vld [vmem:[%s5041_s5 + $0x8] sm:$0xff]  }
 0x1b9   :  { %v1193_v58 = vadd.f32 %v1192_v56, %v4614_v31  ;;  %v1194_v59 = vpop.f32.mrb[61].mxu1  ;;  %2649 = vmatprep.subr.bf16.mxu0 %v4162_v30 }
 0x1ba   :  { %v1195_v5 = vadd.f32 %v1194_v59, %v4617_v33  ;;  %v1196_v7 = vpop.f32.mrb[62].mxu1  ;;  %2604 = vmatprep.mubr.bf16.mxu0 %v1606_v55  ;;  %3773 = vmatpush3.bf16.msra.mxu1 %v4223_v52 }
 0x1bb   :  { %v1197_v9 = vadd.f32 %v1196_v7, %v4614_v31  ;;  %v1198_v10 = vpop.f32.mrb[63].mxu1  ;;  %2605 = vmatmul.mubr.bf16.gmra.mrb[56].mxu0 %v1605_v54  ;;  %v1541_v18 = vmax.f32 %v1193_v58, 0.0  ;;  %v4172_v54 = vld [vmem:[#allocation5 + $0x300] ss:$8 sps:$4 sm:$0xff]  }
 0x1bc   :  { %v1199_v13 = vadd.f32 %v1198_v10, %v4617_v33  ;;  %2650 = vmatpush1.bf16.msra.mxu0 %v4160_v57  ;;  %v1542_v34 = vmax.f32 %v1195_v5, 0.0  ;;  %v4171_v33 = vld [vmem:[#allocation5 + $0x2f4] ss:$8 sps:$4 sm:$0xff]  }
 0x1bd   :  { %v1549_v20 = vmax.f32 %v1197_v9, 0.0  ;;  %2651 = vmatprep.subr.bf16.mxu0 %v4165_v61  ;;  %v4177_v57 = vld [vmem:[#allocation5 + $0x314] ss:$8 sps:$4 sm:$0xff]  }
 0x1be   :  { %v1550_v48 = vmax.f32 %v1199_v13, 0.0  ;;  %v4225_v5 = vld [vmem:[%s5041_s5 + $0x10] sm:$0xff]   ;;  %v4226_v10 = vld [vmem:[%s5041_s5 + $0x58] sm:$0xff]  }
 0x1bf   :  { %v1613_v15 = vpack.c.bf16 %v1549_v20, %v1541_v18  ;;  %v4175_v13 = vld [vmem:[#allocation5 + $0x310] ss:$8 sps:$4 sm:$0xff]   ;;  %v4180_v20 = vld [vmem:[#allocation5 + $0x324] ss:$8 sps:$4 sm:$0xff]  }
 0x1c0   :  { %v1614_v31 = vpack.c.bf16 %v1550_v48, %v1542_v34  ;;  %2652 = vmatpush1.bf16.msra.mxu0 %v4163_v14  ;;  %v1348_v43 = vpop.f32.mrb[64].mxu1  ;;  %v4227_v34 = vld [vmem:[%s5041_s5 + $0x18] sm:$0xff]  }
 0x1c1   :  { %2653 = vmatprep.subr.bf16.mxu0 %v4168_v21  ;;  %v1349_v23 = vadd.f32 %v1348_v43, %v4693_v22  ;;  %v1350_v24 = vpop.f32.mrb[65].mxu1  ;;  %v4183_v43 = vld [vmem:[#allocation5 + $0x334] ss:$8 sps:$4 sm:$0xff]  }
 0x1c2   :  { %2614 = vmatprep.mubr.bf16.mxu0 %v1614_v31  ;;  %v1351_v26 = vadd.f32 %v1350_v24, %v4696_v3  ;;  %v1352_v27 = vpop.f32.mrb[66].mxu1 }
 0x1c3   :  { %2615 = vmatmul.mubr.bf16.gmra.mrb[60].mxu0 %v1613_v15  ;;  %v1433_v28 = vmax.f32 %v1349_v23, 0.0  ;;  %v1353_v35 = vadd.f32 %v1352_v27, %v4693_v22  ;;  %v1354_v0 = vpop.f32.mrb[67].mxu1  ;;  %v4228_v15 = vld [vmem:[%s5041_s5 + $0x60] sm:$0xff]  }
 0x1c4   :  { %2654 = vmatpush1.bf16.msra.mxu0 %v4166_v32  ;;  %2657 = vmatprep.mubr.bf16.mxu0 %v4582_v17  ;;  %v1434_v41 = vmax.f32 %v1351_v26, 0.0  ;;  %v1355_v29 = vadd.f32 %v1354_v0, %v4696_v3  ;;  %v4224_v17 = vld [vmem:[%s5041_s5 + $0x50] sm:$0xff]   ;;  %v4229_v27 = vld [vmem:[%s5041_s5 + $0x20] sm:$0xff]  }
 0x1c5   :  { %2655 = vmatprep.subr.bf16.mxu0 %v4171_v33  ;;  %v1441_v47 = vmax.f32 %v1353_v35, 0.0  ;;  %3774 = vmatprep.subr.bf16.mxu1 %v4224_v17 }
 0x1c6   :  { %v1442_v30 = vmax.f32 %v1355_v29, 0.0  ;;  %3775 = vmatpush3.bf16.msra.mxu1 %v4225_v5 }
 0x1c7   :  { %v4715_v53 = vpack.c.bf16 %v1441_v47, %v1433_v28  ;;  %3776 = vmatprep.subr.bf16.mxu1 %v4226_v10 }
 0x1c8   :  { %2656 = vmatpush1.bf16.msra.mxu0 %v4169_v39  ;;  %v4720_v55 = vpack.c.bf16 %v1442_v30, %v1434_v41  ;;  %v1358_v56 = vpop.f32.mrb[68].mxu1  ;;  %v4186_v41 = vld [vmem:[#allocation5 + $0x344] ss:$8 sps:$4 sm:$0xff]  }
 0x1c9   :  { %2738 = vmatprep.subr.bf16.mxu0 %v4174_v25  ;;  %v1359_v58 = vadd.f32 %v1358_v56, %v4693_v22  ;;  %v1360_v59 = vpop.f32.mrb[69].mxu1  ;;  %v4231_v25 = vld [vmem:[%s5041_s5 + $0x28] sm:$0xff]   ;;  %v4232_v30 = vld [vmem:[%s5041_s5 + $0x70] sm:$0xff]  }
 0x1ca   :  { %v1361_v61 = vadd.f32 %v1360_v59, %v4696_v3  ;;  %v1362_v2 = vpop.f32.mrb[70].mxu1  ;;  %3777 = vmatpush3.bf16.msra.mxu1 %v4227_v34  ;;  %v4195_v34 = vld [vmem:[#allocation5 + $0x374] ss:$8 sps:$4 sm:$0xff]  }
 0x1cb   :  { %2658 = vmatmul.mubr.bf16.vlgmr.msra.gmra.mrb[32].mxu0 %v4579_v12  ;;  %v1449_v7 = vmax.f32 %v1359_v58, 0.0  ;;  %v1363_v8 = vadd.f32 %v1362_v2, %v4693_v22  ;;  %v1364_v9 = vpop.f32.mrb[71].mxu1  ;;  %3778 = vmatprep.subr.bf16.mxu1 %v4228_v15 }
 0x1cc   :  { %2739 = vmatpush1.bf16.msra.mxu0 %v4172_v54  ;;  %2667 = vmatprep.mubr.bf16.mxu0 %v4594_v49  ;;  %v1450_v14 = vmax.f32 %v1361_v61, 0.0  ;;  %v1365_v18 = vadd.f32 %v1364_v9, %v4696_v3  ;;  %v4178_v49 = vld [vmem:[#allocation5 + $0x320] ss:$8 sps:$4 sm:$0xff]   ;;  %v4189_v54 = vld [vmem:[#allocation5 + $0x354] ss:$8 sps:$4 sm:$0xff]  }
 0x1cd   :  { %2740 = vmatprep.subr.bf16.mxu0 %v4177_v57  ;;  %v1457_v21 = vmax.f32 %v1363_v8, 0.0  ;;  %v4233_v61 = vld [vmem:[%s5041_s5 + $0x30] sm:$0xff]  }
 0x1ce   :  { %v1458_v12 = vmax.f32 %v1365_v18, 0.0  ;;  %3779 = vmatpush3.bf16.msra.mxu1 %v4229_v27  ;;  %v4187_v8 = vld [vmem:[#allocation5 + $0x350] ss:$8 sps:$4 sm:$0xff]  }
 0x1cf   :  { %v4737_v48 = vpack.c.bf16 %v1457_v21, %v1449_v7  ;;  %3780 = vmatprep.subr.bf16.mxu1 %v4230_v36 }
 0x1d0   :  { %2741 = vmatpush1.bf16.msra.mxu0 %v4175_v13  ;;  %v4742_v31 = vpack.c.bf16 %v1458_v12, %v1450_v14  ;;  %v1368_v32 = vpop.f32.mrb[72].mxu1  ;;  %v4192_v13 = vld [vmem:[#allocation5 + $0x364] ss:$8 sps:$4 sm:$0xff]  }
 0x1d1   :  { %2742 = vmatprep.subr.bf16.mxu0 %v4180_v20  ;;  %v1369_v33 = vadd.f32 %v1368_v32, %v4693_v22  ;;  %v1370_v23 = vpop.f32.mrb[73].mxu1 }
 0x1d2   :  { %v1371_v24 = vadd.f32 %v1370_v23, %v4696_v3  ;;  %v1372_v26 = vpop.f32.mrb[74].mxu1  ;;  %3781 = vmatpush3.bf16.msra.mxu1 %v4231_v25 }
 0x1d3   :  { %2668 = vmatmul.mubr.bf16.gmra.mrb[36].mxu0 %v4591_v44  ;;  %v1465_v28 = vmax.f32 %v1369_v33, 0.0  ;;  %v1373_v35 = vadd.f32 %v1372_v26, %v4693_v22  ;;  %v1374_v0 = vpop.f32.mrb[75].mxu1  ;;  %3782 = vmatprep.subr.bf16.mxu1 %v4232_v30 }
 0x1d4   :  { %2743 = vmatpush1.bf16.msra.mxu0 %v4178_v49  ;;  %2677 = vmatprep.mubr.bf16.mxu0 %v4608_v19  ;;  %v1466_v38 = vmax.f32 %v1371_v24, 0.0  ;;  %v1375_v39 = vadd.f32 %v1374_v0, %v4696_v3  ;;  %v4184_v19 = vld [vmem:[#allocation5 + $0x340] ss:$8 sps:$4 sm:$0xff]   ;;  %v4193_v24 = vld [vmem:[#allocation5 + $0x370] ss:$8 sps:$4 sm:$0xff]  }
 0x1d5   :  { %2744 = vmatprep.subr.bf16.mxu0 %v4183_v43  ;;  %v1473_v29 = vmax.f32 %v1373_v35, 0.0 }
 0x1d6   :  { %v1474_v44 = vmax.f32 %v1375_v39, 0.0  ;;  %3783 = vmatpush3.bf16.msra.mxu1 %v4233_v61  ;;  %v4201_v39 = vld [vmem:[#allocation5 + $0x394] ss:$8 sps:$4 sm:$0xff]  }
 0x1d7   :  { %v4759_v47 = vpack.c.bf16 %v1473_v29, %v1465_v28  ;;  %v4198_v28 = vld [vmem:[#allocation5 + $0x384] ss:$8 sps:$4 sm:$0xff]  }
 0x1d8   :  { %2745 = vmatpush1.bf16.msra.mxu0 %v4181_v37  ;;  %v4764_v52 = vpack.c.bf16 %v1474_v44, %v1466_v38  ;;  %v1378_v17 = vpop.f32.mrb[76].mxu1  ;;  %v4196_v37 = vld [vmem:[#allocation5 + $0x380] ss:$8 sps:$4 sm:$0xff]  }
 0x1d9   :  { %2746 = vmatprep.subr.bf16.mxu0 %v4186_v41  ;;  %v1379_v56 = vadd.f32 %v1378_v17, %v4693_v22  ;;  %v1380_v57 = vpop.f32.mrb[77].mxu1  ;;  %v4199_v17 = vld [vmem:[#allocation5 + $0x390] ss:$8 sps:$4 sm:$0xff]  }
 0x1da   :  { %v1381_v58 = vadd.f32 %v1380_v57, %v4696_v3  ;;  %v1382_v59 = vpop.f32.mrb[78].mxu1  ;;  %v4204_v57 = vld [vmem:[#allocation5 + $0x3a4] ss:$8 sps:$4 sm:$0xff]  }
 0x1db   :  { %2678 = vmatmul.mubr.bf16.gmra.mrb[40].mxu0 %v4605_v63  ;;  %v1481_v2 = vmax.f32 %v1379_v56, 0.0  ;;  %v1383_v5 = vadd.f32 %v1382_v59, %v4693_v22  ;;  %v1384_v7 = vpop.f32.mrb[79].mxu1  ;;  %v4190_v63 = vld [vmem:[#allocation5 + $0x360] ss:$8 sps:$4 sm:$0xff]  }
 0x1dc   :  { %2747 = vmatpush1.bf16.msra.mxu0 %v4184_v19  ;;  %2687 = vmatprep.mubr.bf16.mxu0 %v4626_v4  ;;  %v1482_v9 = vmax.f32 %v1381_v58, 0.0  ;;  %v1385_v10 = vadd.f32 %v1384_v7, %v4696_v3  ;;  %v4207_v7 = vld [vmem:[#allocation5 + $0x3b4] ss:$8 sps:$4 sm:$0xff]  }
 0x1dd   :  { %2748 = vmatprep.subr.bf16.mxu0 %v4189_v54  ;;  %v1489_v14 = vmax.f32 %v1383_v5, 0.0 }
 0x1de   :  { %v1490_v18 = vmax.f32 %v1385_v10, 0.0 }
 0x1df   :  { %v4775_v20 = vpack.c.bf16 %v1489_v14, %v1481_v2  ;;  %v4202_v2 = vld [vmem:[#allocation5 + $0x3a0] ss:$8 sps:$4 sm:$0xff]  }
 0x1e0   :  { %2749 = vmatpush1.bf16.msra.mxu0 %v4187_v8  ;;  %v4777_v21 = vpack.c.bf16 %v1490_v18, %v1482_v9  ;;  %v1388_v12 = vpop.f32.mrb[80].mxu1 }
 0x1e1   :  { %2750 = vmatprep.subr.bf16.mxu0 %v4192_v13  ;;  %v1389_v15 = vadd.f32 %v1388_v12, %v4693_v22  ;;  %v1390_v4 = vpop.f32.mrb[81].mxu1 }
 0x1e2   :  { %v1391_v49 = vadd.f32 %v1390_v4, %v4696_v3  ;;  %v1392_v32 = vpop.f32.mrb[82].mxu1 }
 0x1e3   :  { %2688 = vmatmul.mubr.bf16.gmra.mrb[44].mxu0 %v4623_v62  ;;  %v1497_v43 = vmax.f32 %v1389_v15, 0.0  ;;  %v1393_v33 = vadd.f32 %v1392_v32, %v4693_v22  ;;  %v1394_v23 = vpop.f32.mrb[83].mxu1  ;;  %v4210_v15 = vld [vmem:[#allocation5 + $0x3c4] ss:$8 sps:$4 sm:$0xff]  }
 0x1e4   :  { %2751 = vmatpush1.bf16.msra.mxu0 %v4190_v63  ;;  %2697 = vmatprep.mubr.bf16.mxu0 %v4638_v40  ;;  %v1498_v26 = vmax.f32 %v1391_v49, 0.0  ;;  %v1395_v27 = vadd.f32 %v1394_v23, %v4696_v3  ;;  %v4205_v63 = vld [vmem:[#allocation5 + $0x3b0] ss:$8 sps:$4 sm:$0xff]   ;;  %v4213_v23 = vld [vmem:[#allocation5 + $0x3d4] ss:$8 sps:$4 sm:$0xff]  }
 0x1e5   :  { %2752 = vmatprep.subr.bf16.mxu0 %v4195_v34  ;;  %v1505_v35 = vmax.f32 %v1393_v33, 0.0 }
 0x1e6   :  { %v1506_v0 = vmax.f32 %v1395_v27, 0.0 }
 0x1e7   :  { %v4785_v36 = vpack.c.bf16 %v1505_v35, %v1497_v43  ;;  %v4208_v43 = vld [vmem:[#allocation5 + $0x3c0] ss:$8 sps:$4 sm:$0xff]  }
 0x1e8   :  { %2753 = vmatpush1.bf16.msra.mxu0 %v4193_v24  ;;  %v4787_v62 = vpack.c.bf16 %v1506_v0, %v1498_v26  ;;  %v1398_v38 = vpop.f32.mrb[84].mxu1 }
 0x1e9   :  { %2754 = vmatprep.subr.bf16.mxu0 %v4198_v28  ;;  %v1399_v41 = vadd.f32 %v1398_v38, %v4693_v22  ;;  %v1400_v29 = vpop.f32.mrb[85].mxu1 }
 0x1ea   :  { %v1401_v40 = vadd.f32 %v1400_v29, %v4696_v3  ;;  %v1402_v44 = vpop.f32.mrb[86].mxu1 }
 0x1eb   :  { %2698 = vmatmul.mubr.bf16.gmra.mrb[48].mxu0 %v4635_v16  ;;  %v1513_v25 = vmax.f32 %v1399_v41, 0.0  ;;  %v1403_v30 = vadd.f32 %v1402_v44, %v4693_v22  ;;  %v1404_v19 = vpop.f32.mrb[87].mxu1  ;;  %v4216_v41 = vld [vmem:[#allocation5 + $0x3e4] ss:$8 sps:$4 sm:$0xff]  }
 0x1ec   :  { %2755 = vmatpush1.bf16.msra.mxu0 %v4196_v37  ;;  %2707 = vmatprep.mubr.bf16.mxu0 %v4650_v51  ;;  %v1514_v54 = vmax.f32 %v1401_v40, 0.0  ;;  %v1405_v56 = vadd.f32 %v1404_v19, %v4696_v3  ;;  %v4211_v37 = vld [vmem:[#allocation5 + $0x3d0] ss:$8 sps:$4 sm:$0xff]  }
 0x1ed   :  { %2756 = vmatprep.subr.bf16.mxu0 %v4201_v39  ;;  %v1521_v58 = vmax.f32 %v1403_v30, 0.0 }
 0x1ee   :  { %v1522_v59 = vmax.f32 %v1405_v56, 0.0 }
 0x1ef   :  { %v4795_v61 = vpack.c.bf16 %v1521_v58, %v1513_v25  ;;  %v4214_v25 = vld [vmem:[#allocation5 + $0x3e0] ss:$8 sps:$4 sm:$0xff]  }
 0x1f0   :  { %2757 = vmatpush1.bf16.msra.mxu0 %v4199_v17  ;;  %v4797_v16 = vpack.c.bf16 %v1522_v59, %v1514_v54  ;;  %v1408_v5 = vpop.f32.mrb[88].mxu1 }
 0x1f1   :  { %2758 = vmatprep.subr.bf16.mxu0 %v4204_v57  ;;  %v1409_v8 = vadd.f32 %v1408_v5, %v4693_v22  ;;  %v1410_v9 = vpop.f32.mrb[89].mxu1 }
 0x1f2   :  { %v1411_v51 = vadd.f32 %v1410_v9, %v4696_v3  ;;  %v1412_v10 = vpop.f32.mrb[90].mxu1 }
 0x1f3   :  { %2708 = vmatmul.mubr.bf16.gmra.mrb[52].mxu0 %v4647_v42  ;;  %v1529_v13 = vmax.f32 %v1409_v8, 0.0  ;;  %v1413_v14 = vadd.f32 %v1412_v10, %v4693_v22  ;;  %v1414_v18 = vpop.f32.mrb[91].mxu1 }
 0x1f4   :  { %2759 = vmatpush1.bf16.msra.mxu0 %v4202_v2  ;;  %2717 = vmatprep.mubr.bf16.mxu0 %v4662_v6  ;;  %v1530_v12 = vmax.f32 %v1411_v51, 0.0  ;;  %v1415_v34 = vadd.f32 %v1414_v18, %v4696_v3 }
 0x1f5   :  { %2760 = vmatprep.subr.bf16.mxu0 %v4207_v7  ;;  %v1537_v4 = vmax.f32 %v1413_v14, 0.0 }
 0x1f6   :  { %v1538_v49 = vmax.f32 %v1415_v34, 0.0 }
 0x1f7   :  { %v1609_v32 = vpack.c.bf16 %v1537_v4, %v1529_v13 }
 0x1f8   :  { %2761 = vmatpush1.bf16.msra.mxu0 %v4205_v63  ;;  %v1610_v33 = vpack.c.bf16 %v1538_v49, %v1530_v12  ;;  %v1418_v42 = vpop.f32.mrb[92].mxu1 }
 0x1f9   :  { %2762 = vmatprep.subr.bf16.mxu0 %v4210_v15  ;;  %v1419_v24 = vadd.f32 %v1418_v42, %v4693_v22  ;;  %v1420_v26 = vpop.f32.mrb[93].mxu1 }
 0x1fa   :  { %v1421_v27 = vadd.f32 %v1420_v26, %v4696_v3  ;;  %v1422_v6 = vpop.f32.mrb[94].mxu1 }
 0x1fb   :  { %2718 = vmatmul.mubr.bf16.gmra.mrb[56].mxu0 %v4659_v1  ;;  %v1545_v28 = vmax.f32 %v1419_v24, 0.0  ;;  %v1423_v35 = vadd.f32 %v1422_v6, %v4693_v22  ;;  %v1424_v0 = vpop.f32.mrb[95].mxu1  ;;  %v4219_v1 = vld [vmem:[#allocation5 + $0x3f4] ss:$8 sps:$4 sm:$0xff]   ;;  %v4217_v22 = vld [vmem:[#allocation5 + $0x3f0] ss:$8 sps:$4 sm:$0xff]  }
 0x1fc   :  { %2763 = vmatpush1.bf16.msra.mxu0 %v4208_v43  ;;  %2727 = vmatprep.mubr.bf16.mxu0 %v4674_v50  ;;  %v1546_v38 = vmax.f32 %v1421_v27, 0.0  ;;  %v1425_v39 = vadd.f32 %v1424_v0, %v4696_v3  ;;  %v4235_v50 = vld [vmem:[%s5041_s5 + $0x38] sm:$0xff]   ;;  %v4236_v3 = vld [vmem:[%s5043_s7] sm:$0xff]  }
 0x1fd   :  { %2764 = vmatprep.subr.bf16.mxu0 %v4213_v23  ;;  %v1553_v29 = vmax.f32 %v1423_v35, 0.0 }
 0x1fe   :  { %v1554_v40 = vmax.f32 %v1425_v39, 0.0 }
 0x1ff   :  { %v1617_v44 = vpack.c.bf16 %v1553_v29, %v1545_v28 }
 0x200   :  { %2765 = vmatpush1.bf16.msra.mxu0 %v4211_v37  ;;  %v1618_v30 = vpack.c.bf16 %v1554_v40, %v1546_v38 }
 0x201   :  { %2766 = vmatprep.subr.bf16.mxu0 %v4216_v41 }
 0x203   :  { %2728 = vmatmul.mubr.bf16.gmra.mrb[60].mxu0 %v4671_v45  ;;  %v4234_v45 = vld [vmem:[%s5041_s5 + $0x78] sm:$0xff]  }
 0x204   :  { %2767 = vmatpush1.bf16.msra.mxu0 %v4214_v25  ;;  %2770 = vmatprep.mubr.bf16.mxu0 %v4720_v55 }
 0x205   :  { %2768 = vmatprep.subr.bf16.mxu0 %v4219_v1  ;;  %3784 = vmatprep.subr.bf16.mxu1 %v4234_v45 }
 0x206   :  { %3785 = vmatpush3.bf16.msra.mxu1 %v4235_v50 }
 0x207   :  { %3846 = vmatprep.subr.bf16.mxu1 %v4236_v3 }
 0x208   :  { %2769 = vmatpush1.bf16.msra.mxu0 %v4217_v22 }
 0x20b   :  { %2771 = vmatmul.mubr.bf16.vlgmr.msra.gmra.mrb[32].mxu0 %v4715_v53  ;;  %v1747_v53 = vld [vmem:[%s5040_s4] sm:$0x3] }
 0x20c   :  { %2780 = vmatprep.mubr.bf16.mxu0 %v4742_v31  ;;  %v4838_v55 = vrot.slane %v1747_v53, %v217_v60 }
 0x213   :  { %2781 = vmatmul.mubr.bf16.gmra.mrb[36].mxu0 %v4737_v48  ;;  %v4842_v48 = vrot.slane %v1747_v53, %v221_v11 }
 0x214   :  { %2790 = vmatprep.mubr.bf16.mxu0 %v4764_v52 }
 0x21b   :  { %2791 = vmatmul.mubr.bf16.gmra.mrb[40].mxu0 %v4759_v47 }
 0x21c   :  { %2800 = vmatprep.mubr.bf16.mxu0 %v4777_v21 }
 0x223   :  { %2801 = vmatmul.mubr.bf16.gmra.mrb[44].mxu0 %v4775_v20 }
 0x224   :  { %2810 = vmatprep.mubr.bf16.mxu0 %v4787_v62 }
 0x22b   :  { %2811 = vmatmul.mubr.bf16.gmra.mrb[48].mxu0 %v4785_v36 }
 0x22c   :  { %2820 = vmatprep.mubr.bf16.mxu0 %v4797_v16 }
 0x233   :  { %2821 = vmatmul.mubr.bf16.gmra.mrb[52].mxu0 %v4795_v61  ;;  %v4237_v61 = vld [vmem:[%s5043_s7 + $0x8] sm:$0xff]  }
 0x234   :  { %2830 = vmatprep.mubr.bf16.mxu0 %v1610_v33 }
 0x23b   :  { %2831 = vmatmul.mubr.bf16.gmra.mrb[56].mxu0 %v1609_v32 }
 0x23c   :  { %2840 = vmatprep.mubr.bf16.mxu0 %v1618_v30 }
 0x243   :  { %2841 = vmatmul.mubr.bf16.gmra.mrb[60].mxu0 %v1617_v44 }
 0x2de   :  { %v2772_v31 = vpop.f32.mrb[32].mxu0 }
 0x2df   :  { %v3870_v47 = vadd.f32 %v2772_v31, %v4838_v55  ;;  %v2774_v52 = vpop.f32.mrb[33].mxu0 }
 0x2e0   :  { %v3871_v20 = vadd.f32 %v2774_v52, %v4842_v48  ;;  %v2776_v21 = vpop.f32.mrb[34].mxu0 }
 0x2e1   :  { %v3872_v36 = vadd.f32 %v2776_v21, %v4838_v55  ;;  %v2778_v62 = vpop.f32.mrb[35].mxu0  ;;  %v2851_v17 = vmax.f32 %v3870_v47, 0.0 }
 0x2e2   :  { %v3873_v19 = vadd.f32 %v2778_v62, %v4842_v48  ;;  %v2852_v60 = vmax.f32 %v3871_v20, 0.0 }
 0x2e3   :  { %v2853_v54 = vmax.f32 %v3872_v36, 0.0 }
 0x2e4   :  { %v2854_v56 = vmax.f32 %v3873_v19, 0.0 }
 0x2e5   :  { %v2883_v57 = vpack.c.bf16 %v2853_v54, %v2851_v17 }
 0x2e6   :  { %v2884_v46 = vpack.c.bf16 %v2854_v56, %v2852_v60  ;;  %v2782_v11 = vpop.f32.mrb[36].mxu0 }
 0x2e7   :  { %v3874_v58 = vadd.f32 %v2782_v11, %v4838_v55  ;;  %v2784_v59 = vpop.f32.mrb[37].mxu0 }
 0x2e8   :  { %v3875_v2 = vadd.f32 %v2784_v59, %v4842_v48  ;;  %v2786_v16 = vpop.f32.mrb[38].mxu0  ;;  %3066 = vmatprep.mubr.bf16.mxu1 %v2884_v46 }
 0x2e9   :  { %v3876_v5 = vadd.f32 %v2786_v16, %v4838_v55  ;;  %v2788_v7 = vpop.f32.mrb[39].mxu0  ;;  %3067 = vmatmul.mubr.bf16.vlgmr.msra.gmra.mrb[96].mxu1 %v2883_v57  ;;  %v2855_v9 = vmax.f32 %v3874_v58, 0.0 }
 0x2ea   :  { %v3877_v8 = vadd.f32 %v2788_v7, %v4842_v48  ;;  %3847 = vmatpush3.bf16.msra.mxu1 %v4236_v3  ;;  %v2856_v10 = vmax.f32 %v3875_v2, 0.0 }
 0x2eb   :  { %v2857_v51 = vmax.f32 %v3876_v5, 0.0  ;;  %3848 = vmatprep.subr.bf16.mxu1 %v4237_v61 }
 0x2ec   :  { %v2858_v13 = vmax.f32 %v3877_v8, 0.0 }
 0x2ed   :  { %v2885_v14 = vpack.c.bf16 %v2857_v51, %v2855_v9 }
 0x2ee   :  { %v2886_v18 = vpack.c.bf16 %v2858_v13, %v2856_v10  ;;  %v2792_v63 = vpop.f32.mrb[40].mxu0  ;;  %3849 = vmatpush3.bf16.msra.mxu1 %v4237_v61 }
 0x2ef   :  { %v3878_v12 = vadd.f32 %v2792_v63, %v4838_v55  ;;  %v2794_v34 = vpop.f32.mrb[41].mxu0 }
 0x2f0   :  { %v3879_v15 = vadd.f32 %v2794_v34, %v4842_v48  ;;  %v2796_v4 = vpop.f32.mrb[42].mxu0  ;;  %3074 = vmatprep.mubr.bf16.mxu1 %v2886_v18 }
 0x2f1   :  { %v3880_v49 = vadd.f32 %v2796_v4, %v4838_v55  ;;  %v2798_v32 = vpop.f32.mrb[43].mxu0  ;;  %3075 = vmatmul.mubr.bf16.gmra.mrb[100].mxu1 %v2885_v14  ;;  %v2859_v33 = vmax.f32 %v3878_v12, 0.0 }
 0x2f2   :  { %v3881_v43 = vadd.f32 %v2798_v32, %v4842_v48  ;;  %v2860_v23 = vmax.f32 %v3879_v15, 0.0 }
 0x2f3   :  { %v2861_v42 = vmax.f32 %v3880_v49, 0.0 }
 0x2f4   :  { %v2862_v24 = vmax.f32 %v3881_v43, 0.0 }
 0x2f5   :  { %v2887_v26 = vpack.c.bf16 %v2861_v42, %v2859_v33 }
 0x2f6   :  { %v2888_v27 = vpack.c.bf16 %v2862_v24, %v2860_v23  ;;  %v2802_v6 = vpop.f32.mrb[44].mxu0 }
 0x2f7   :  { %v3882_v28 = vadd.f32 %v2802_v6, %v4838_v55  ;;  %v2804_v35 = vpop.f32.mrb[45].mxu0 }
 0x2f8   :  { %v3883_v0 = vadd.f32 %v2804_v35, %v4842_v48  ;;  %v2806_v37 = vpop.f32.mrb[46].mxu0  ;;  %3082 = vmatprep.mubr.bf16.mxu1 %v2888_v27 }
 0x2f9   :  { %v3884_v38 = vadd.f32 %v2806_v37, %v4838_v55  ;;  %v2808_v39 = vpop.f32.mrb[47].mxu0  ;;  %3083 = vmatmul.mubr.bf16.gmra.mrb[104].mxu1 %v2887_v26  ;;  %v2863_v29 = vmax.f32 %v3882_v28, 0.0 }
 0x2fa   :  { %v3885_v41 = vadd.f32 %v2808_v39, %v4842_v48  ;;  %v2864_v44 = vmax.f32 %v3883_v0, 0.0 }
 0x2fb   :  { %v2865_v40 = vmax.f32 %v3884_v38, 0.0 }
 0x2fc   :  { %v2866_v25 = vmax.f32 %v3885_v41, 0.0 }
 0x2fd   :  { %v2889_v30 = vpack.c.bf16 %v2865_v40, %v2863_v29  ;;  %v4238_v29 = vld [vmem:[%s5043_s7 + $0x10] sm:$0xff]   ;;  %v4888_v40 = vld [vmem:[%s5042_s6] ss:$0 sm:$0xff] }
 0x2fe   :  { %v2890_v1 = vpack.c.bf16 %v2866_v25, %v2864_v44  ;;  %v2812_v22 = vpop.f32.mrb[48].mxu0  ;;  %3850 = vmatprep.subr.bf16.mxu1 %v4238_v29 }
 0x2ff   :  { %v3886_v45 = vadd.f32 %v2812_v22, %v4838_v55  ;;  %v2814_v50 = vpop.f32.mrb[49].mxu0  ;;  %3851 = vmatpush3.bf16.msra.mxu1 %v4238_v29 }
 0x300   :  { %v3887_v3 = vadd.f32 %v2814_v50, %v4842_v48  ;;  %v2816_v53 = vpop.f32.mrb[50].mxu0  ;;  %3090 = vmatprep.mubr.bf16.mxu1 %v2890_v1 }
 0x301   :  { %v3888_v31 = vadd.f32 %v2816_v53, %v4838_v55  ;;  %v2818_v47 = vpop.f32.mrb[51].mxu0  ;;  %3091 = vmatmul.mubr.bf16.gmra.mrb[108].mxu1 %v2889_v30  ;;  %v2867_v20 = vmax.f32 %v3886_v45, 0.0 }
 0x302   :  { %v3889_v52 = vadd.f32 %v2818_v47, %v4842_v48  ;;  %v2868_v36 = vmax.f32 %v3887_v3, 0.0 }
 0x303   :  { %v2869_v21 = vmax.f32 %v3888_v31, 0.0 }
 0x304   :  { %v2870_v62 = vmax.f32 %v3889_v52, 0.0 }
 0x305   :  { %v2891_v19 = vpack.c.bf16 %v2869_v21, %v2867_v20 }
 0x306   :  { %v2892_v17 = vpack.c.bf16 %v2870_v62, %v2868_v36  ;;  %v2822_v54 = vpop.f32.mrb[52].mxu0 }
 0x307   :  { %v3890_v60 = vadd.f32 %v2822_v54, %v4838_v55  ;;  %v2824_v56 = vpop.f32.mrb[53].mxu0 }
 0x308   :  { %v3891_v57 = vadd.f32 %v2824_v56, %v4842_v48  ;;  %v2826_v46 = vpop.f32.mrb[54].mxu0  ;;  %3098 = vmatprep.mubr.bf16.mxu1 %v2892_v17 }
 0x309   :  { %v3892_v11 = vadd.f32 %v2826_v46, %v4838_v55  ;;  %v2828_v58 = vpop.f32.mrb[55].mxu0  ;;  %3099 = vmatmul.mubr.bf16.gmra.mrb[112].mxu1 %v2891_v19  ;;  %v2871_v61 = vmax.f32 %v3890_v60, 0.0 }
 0x30a   :  { %v3893_v59 = vadd.f32 %v2828_v58, %v4842_v48  ;;  %v2872_v16 = vmax.f32 %v3891_v57, 0.0 }
 0x30b   :  { %v2873_v2 = vmax.f32 %v3892_v11, 0.0 }
 0x30c   :  { %v2874_v5 = vmax.f32 %v3893_v59, 0.0 }
 0x30d   :  { %v2893_v7 = vpack.c.bf16 %v2873_v2, %v2871_v61 }
 0x30e   :  { %v2894_v8 = vpack.c.bf16 %v2874_v5, %v2872_v16  ;;  %v2832_v9 = vpop.f32.mrb[56].mxu0 }
 0x30f   :  { %v3894_v51 = vadd.f32 %v2832_v9, %v4838_v55  ;;  %v2834_v10 = vpop.f32.mrb[57].mxu0 }
 0x310   :  { %v3895_v13 = vadd.f32 %v2834_v10, %v4842_v48  ;;  %v2836_v14 = vpop.f32.mrb[58].mxu0  ;;  %3106 = vmatprep.mubr.bf16.mxu1 %v2894_v8 }
 0x311   :  { %v3896_v18 = vadd.f32 %v2836_v14, %v4838_v55  ;;  %v2838_v63 = vpop.f32.mrb[59].mxu0  ;;  %3107 = vmatmul.mubr.bf16.gmra.mrb[116].mxu1 %v2893_v7  ;;  %v2875_v34 = vmax.f32 %v3894_v51, 0.0 }
 0x312   :  { %v3897_v12 = vadd.f32 %v2838_v63, %v4842_v48  ;;  %v2876_v4 = vmax.f32 %v3895_v13, 0.0 }
 0x313   :  { %v2877_v15 = vmax.f32 %v3896_v18, 0.0 }
 0x314   :  { %v2878_v49 = vmax.f32 %v3897_v12, 0.0 }
 0x315   :  { %v2895_v32 = vpack.c.bf16 %v2877_v15, %v2875_v34 }
 0x316   :  { %v2896_v43 = vpack.c.bf16 %v2878_v49, %v2876_v4  ;;  %v2842_v33 = vpop.f32.mrb[60].mxu0 }
 0x317   :  { %v3898_v42 = vadd.f32 %v2842_v33, %v4838_v55  ;;  %v2844_v23 = vpop.f32.mrb[61].mxu0 }
 0x318   :  { %v3899_v24 = vadd.f32 %v2844_v23, %v4842_v48  ;;  %v2846_v26 = vpop.f32.mrb[62].mxu0  ;;  %3114 = vmatprep.mubr.bf16.mxu1 %v2896_v43 }
 0x319   :  { %v3900_v27 = vadd.f32 %v2846_v26, %v4838_v55  ;;  %v2848_v6 = vpop.f32.mrb[63].mxu0  ;;  %3115 = vmatmul.mubr.bf16.gmra.mrb[120].mxu1 %v2895_v32  ;;  %v2879_v35 = vmax.f32 %v3898_v42, 0.0  ;;  %v4239_v55 = vld [vmem:[%s5043_s7 + $0x18] sm:$0xff]  }
 0x31a   :  { %v3901_v28 = vadd.f32 %v2848_v6, %v4842_v48  ;;  %v2880_v37 = vmax.f32 %v3899_v24, 0.0  ;;  %3852 = vmatprep.subr.bf16.mxu1 %v4239_v55 }
 0x31b   :  { %v2881_v0 = vmax.f32 %v3900_v27, 0.0  ;;  %3853 = vmatpush3.bf16.msra.mxu1 %v4239_v55 }
 0x31c   :  { %v2882_v38 = vmax.f32 %v3901_v28, 0.0 }
 0x31d   :  { %v2897_v39 = vpack.c.bf16 %v2881_v0, %v2879_v35 }
 0x31e   :  { %v2898_v41 = vpack.c.bf16 %v2882_v38, %v2880_v37 }
 0x320   :  { %3122 = vmatprep.mubr.bf16.mxu1 %v2898_v41 }
 0x321   :  { %3123 = vmatmul.mubr.bf16.gmra.mrb[124].mxu1 %v2897_v39 }
 0x3bc   :  { %v3786_v48 = vpop.f32.mrb[96].mxu1 }
 0x3bd   :  { %v3787_v44 = vpop.f32.mrb[97].mxu1 }
 0x3be   :  { %v3788_v25 = vadd.f32 %v3787_v44, %v3786_v48  ;;  %v3789_v30 = vpop.f32.mrb[98].mxu1 }
 0x3bf   :  { %v3790_v1 = vpop.f32.mrb[99].mxu1 }
 0x3c0   :  { %v3069_v22 = vadd.f32 %v3788_v25, %v4888_v40  ;;  %v3791_v45 = vadd.f32 %v3790_v1, %v3789_v30 }
 0x3c2   :  { %v3072_v50 = vadd.f32 %v3791_v45, %v4888_v40  ;;  %v3131_v3 = vmax.f32 %v3069_v22, 0.0 }
 0x3c4   :  { %v3132_v53 = vmax.f32 %v3072_v50, 0.0  ;;  %v3792_v31 = vpop.f32.mrb[100].mxu1 }
 0x3c5   :  { %v3793_v47 = vpop.f32.mrb[101].mxu1 }
 0x3c6   :  { %v3147_v52 = vpack.c.bf16 %v3132_v53, %v3131_v3  ;;  %v3794_v20 = vadd.f32 %v3793_v47, %v3792_v31  ;;  %v3795_v21 = vpop.f32.mrb[102].mxu1 }
 0x3c7   :  { %v3796_v36 = vpop.f32.mrb[103].mxu1 }
 0x3c8   :  { %v3077_v62 = vadd.f32 %v3794_v20, %v4888_v40  ;;  %v3797_v19 = vadd.f32 %v3796_v36, %v3795_v21  ;;  %3854 = vmatprep.mubr.msk.bf16.mxu1 %vm3194_vm0, %v3147_v52 }
 0x3ca   :  { %v3080_v17 = vadd.f32 %v3797_v19, %v4888_v40  ;;  %v3133_v54 = vmax.f32 %v3077_v62, 0.0 }
 0x3cc   :  { %v3134_v60 = vmax.f32 %v3080_v17, 0.0  ;;  %v3798_v56 = vpop.f32.mrb[104].mxu1 }
 0x3cd   :  { %v3799_v57 = vpop.f32.mrb[105].mxu1 }
 0x3ce   :  { %v3148_v46 = vpack.c.bf16 %v3134_v60, %v3133_v54  ;;  %v3800_v11 = vadd.f32 %v3799_v57, %v3798_v56  ;;  %v3801_v58 = vpop.f32.mrb[106].mxu1 }
 0x3cf   :  { %v3802_v59 = vpop.f32.mrb[107].mxu1 }
 0x3d0   :  { %v3085_v61 = vadd.f32 %v3800_v11, %v4888_v40  ;;  %v3803_v2 = vadd.f32 %v3802_v59, %v3801_v58  ;;  %3855 = vmatmul.mubr.msk.bf16.vlgmr.msra.gmra.mrb[128].mxu1 %vm3194_vm0, %v3148_v46  ;;  %v4917_v58 = vld [vmem:[%s5044_s8] ss:$0 sm:$0xff] }
 0x3d2   :  { %v3088_v16 = vadd.f32 %v3803_v2, %v4888_v40  ;;  %v3135_v5 = vmax.f32 %v3085_v61, 0.0 }
 0x3d4   :  { %v3136_v7 = vmax.f32 %v3088_v16, 0.0  ;;  %v3804_v8 = vpop.f32.mrb[108].mxu1 }
 0x3d5   :  { %v3805_v9 = vpop.f32.mrb[109].mxu1 }
 0x3d6   :  { %v3149_v51 = vpack.c.bf16 %v3136_v7, %v3135_v5  ;;  %v3806_v10 = vadd.f32 %v3805_v9, %v3804_v8  ;;  %v3807_v13 = vpop.f32.mrb[110].mxu1 }
 0x3d7   :  { %v3808_v14 = vpop.f32.mrb[111].mxu1 }
 0x3d8   :  { %v3093_v18 = vadd.f32 %v3806_v10, %v4888_v40  ;;  %v3809_v63 = vadd.f32 %v3808_v14, %v3807_v13  ;;  %3858 = vmatprep.mubr.msk.bf16.mxu1 %vm3194_vm0, %v3149_v51 }
 0x3da   :  { %v3096_v12 = vadd.f32 %v3809_v63, %v4888_v40  ;;  %v3137_v34 = vmax.f32 %v3093_v18, 0.0 }
 0x3dc   :  { %v3138_v15 = vmax.f32 %v3096_v12, 0.0  ;;  %v3810_v4 = vpop.f32.mrb[112].mxu1 }
 0x3dd   :  { %v3811_v49 = vpop.f32.mrb[113].mxu1 }
 0x3de   :  { %v3150_v32 = vpack.c.bf16 %v3138_v15, %v3137_v34  ;;  %v3812_v43 = vadd.f32 %v3811_v49, %v3810_v4  ;;  %v3813_v33 = vpop.f32.mrb[114].mxu1 }
 0x3df   :  { %v3814_v42 = vpop.f32.mrb[115].mxu1 }
 0x3e0   :  { %v3101_v23 = vadd.f32 %v3812_v43, %v4888_v40  ;;  %v3815_v24 = vadd.f32 %v3814_v42, %v3813_v33  ;;  %3859 = vmatmul.mubr.msk.bf16.gmra.mrb[132].mxu1 %vm3194_vm0, %v3150_v32 }
 0x3e2   :  { %v3104_v26 = vadd.f32 %v3815_v24, %v4888_v40  ;;  %v3139_v27 = vmax.f32 %v3101_v23, 0.0 }
 0x3e4   :  { %v3140_v6 = vmax.f32 %v3104_v26, 0.0  ;;  %v3816_v28 = vpop.f32.mrb[116].mxu1 }
 0x3e5   :  { %v3817_v35 = vpop.f32.mrb[117].mxu1 }
 0x3e6   :  { %v3151_v0 = vpack.c.bf16 %v3140_v6, %v3139_v27  ;;  %v3818_v37 = vadd.f32 %v3817_v35, %v3816_v28  ;;  %v3819_v38 = vpop.f32.mrb[118].mxu1 }
 0x3e7   :  { %v3820_v39 = vpop.f32.mrb[119].mxu1 }
 0x3e8   :  { %v3109_v41 = vadd.f32 %v3818_v37, %v4888_v40  ;;  %v3821_v29 = vadd.f32 %v3820_v39, %v3819_v38  ;;  %3862 = vmatprep.mubr.msk.bf16.mxu1 %vm3194_vm0, %v3151_v0 }
 0x3ea   :  { %v3112_v55 = vadd.f32 %v3821_v29, %v4888_v40  ;;  %v3141_v48 = vmax.f32 %v3109_v41, 0.0 }
 0x3ec   :  { %v3142_v44 = vmax.f32 %v3112_v55, 0.0  ;;  %v3822_v25 = vpop.f32.mrb[120].mxu1 }
 0x3ed   :  { %v3823_v30 = vpop.f32.mrb[121].mxu1 }
 0x3ee   :  { %v3152_v1 = vpack.c.bf16 %v3142_v44, %v3141_v48  ;;  %v3824_v22 = vadd.f32 %v3823_v30, %v3822_v25  ;;  %v3825_v45 = vpop.f32.mrb[122].mxu1 }
 0x3ef   :  { %v3826_v50 = vpop.f32.mrb[123].mxu1 }
 0x3f0   :  { %v3117_v3 = vadd.f32 %v3824_v22, %v4888_v40  ;;  %v3827_v53 = vadd.f32 %v3826_v50, %v3825_v45  ;;  %3863 = vmatmul.mubr.msk.bf16.gmra.mrb[136].mxu1 %vm3194_vm0, %v3152_v1 }
 0x3f2   :  { %v3120_v31 = vadd.f32 %v3827_v53, %v4888_v40  ;;  %v3143_v47 = vmax.f32 %v3117_v3, 0.0 }
 0x3f4   :  { %v3144_v52 = vmax.f32 %v3120_v31, 0.0  ;;  %v3828_v20 = vpop.f32.mrb[124].mxu1 }
 0x3f5   :  { %v3829_v21 = vpop.f32.mrb[125].mxu1 }
 0x3f6   :  { %v3153_v36 = vpack.c.bf16 %v3144_v52, %v3143_v47  ;;  %v3830_v62 = vadd.f32 %v3829_v21, %v3828_v20  ;;  %v3831_v19 = vpop.f32.mrb[126].mxu1 }
 0x3f7   :  { %v3832_v17 = vpop.f32.mrb[127].mxu1 }
 0x3f8   :  { %v3125_v54 = vadd.f32 %v3830_v62, %v4888_v40  ;;  %v3833_v60 = vadd.f32 %v3832_v17, %v3831_v19  ;;  %3866 = vmatprep.mubr.msk.bf16.mxu1 %vm3194_vm0, %v3153_v36 }
 0x3fa   :  { %v3128_v56 = vadd.f32 %v3833_v60, %v4888_v40  ;;  %v3145_v57 = vmax.f32 %v3125_v54, 0.0  ;;  %v4924_v40 = vld [vmem:[%s5045_s9] ss:$0 sm:$0xff] }
 0x3fc   :  { %v3146_v46 = vmax.f32 %v3128_v56, 0.0 }
 0x3fe   :  { %v3154_v11 = vpack.c.bf16 %v3146_v46, %v3145_v57 }
 0x400   :  { %3867 = vmatmul.mubr.msk.bf16.gmra.mrb[140].mxu1 %vm3194_vm0, %v3154_v11 }
 0x4a3   :  { %v3856_v59 = vpop.f32.mrb[128].mxu1 }
 0x4a4   :  { %v3262_v61 = vadd.f32 %v3856_v59, %v4917_v58  ;;  %v3253_v2 = vpop.f32.mrb[129].mxu1 }
 0x4a5   :  { %v3254_v16 = vadd.f32 %v4917_v58, %v3253_v2  ;;  %v3857_v5 = vpop.f32.mrb[130].mxu1 }
 0x4a6   :  { %v3318_v7 = vmax.f32 %v3262_v61, 0.0  ;;  %v3265_v8 = vadd.f32 %v3857_v5, %v4917_v58  ;;  %v3256_v9 = vpop.f32.mrb[131].mxu1 }
 0x4a7   :  { %v3316_v51 = vmax.f32 %v3254_v16, 0.0  ;;  %v3257_v10 = vadd.f32 %v4917_v58, %v3256_v9 }
 0x4a8   :  { %v3319_v13 = vmax.f32 %v3265_v8, 0.0  ;;  %v3341_v14 = vmul.f32 %v4924_v40, %v3318_v7 }
 0x4a9   :  { %v3317_v18 = vmax.f32 %v3257_v10, 0.0  ;;  %v3339_v63 = vmul.f32 %v4924_v40, %v3316_v51 }
 0x4aa   :  { %v3362_v12 = vsel %vm3355_vm1, %v3341_v14, 0.0  ;;  %v3342_v34 = vmul.f32 %v4924_v40, %v3319_v13 }
 0x4ab   :  { %3363 = vadd.xlane.f32.xlu1 %v3362_v12  ;;  %v3356_v15 = vsel %vm3355_vm1, %v3339_v63, 0.0  ;;  %v3340_v4 = vmul.f32 %v4924_v40, %v3317_v18 }
 0x4ac   :  { %3357 = vadd.xlane.f32.xlu0 %v3356_v15  ;;  %v3365_v49 = vsel %vm3355_vm1, %v3342_v34, 0.0 }
 0x4ad   :  { %v3359_v32 = vsel %vm3355_vm1, %v3340_v4, 0.0  ;;  %v3769_v4 = vld [vmem:[#allocation2] ss:$0 sm:$0xff] }
 0x4af   :  { %3366 = vadd.xlane.f32.xlu1 %v3365_v49 }
 0x4b0   :  { %3360 = vadd.xlane.f32.xlu0 %v3359_v32 }
 0x4b3   :  { %v3860_v43 = vpop.f32.mrb[132].mxu1 }
 0x4b4   :  { %v3278_v33 = vadd.f32 %v3860_v43, %v4917_v58  ;;  %v3269_v42 = vpop.f32.mrb[133].mxu1 }
 0x4b5   :  { %v3270_v23 = vadd.f32 %v4917_v58, %v3269_v42  ;;  %v3861_v24 = vpop.f32.mrb[134].mxu1 }
 0x4b6   :  { %v3322_v26 = vmax.f32 %v3278_v33, 0.0  ;;  %v3281_v27 = vadd.f32 %v3861_v24, %v4917_v58  ;;  %v3272_v6 = vpop.f32.mrb[135].mxu1 }
 0x4b7   :  { %v3320_v28 = vmax.f32 %v3270_v23, 0.0  ;;  %v3273_v35 = vadd.f32 %v4917_v58, %v3272_v6 }
 0x4b8   :  { %v3323_v0 = vmax.f32 %v3281_v27, 0.0  ;;  %v3345_v37 = vmul.f32 %v4924_v40, %v3322_v26 }
 0x4b9   :  { %v3321_v38 = vmax.f32 %v3273_v35, 0.0  ;;  %v3343_v29 = vmul.f32 %v4924_v40, %v3320_v28 }
 0x4ba   :  { %v3374_v39 = vsel %vm3355_vm1, %v3345_v37, 0.0  ;;  %v3346_v41 = vmul.f32 %v4924_v40, %v3323_v0 }
 0x4bb   :  { %3375 = vadd.xlane.f32.xlu0 %v3374_v39  ;;  %v3344_v48 = vmul.f32 %v4924_v40, %v3321_v38  ;;  %v3368_v44 = vsel %vm3355_vm1, %v3343_v29, 0.0 }
 0x4bc   :  { %v3377_v55 = vsel %vm3355_vm1, %v3346_v41, 0.0 }
 0x4bd   :  { %3378 = vadd.xlane.f32.xlu1 %v3377_v55  ;;  %v3371_v25 = vsel %vm3355_vm1, %v3344_v48, 0.0 }
 0x4bf   :  { %3369 = vadd.xlane.f32.xlu0 %v3368_v44 }
 0x4c1   :  { %3372 = vadd.xlane.f32.xlu1 %v3371_v25 }
 0x4c3   :  { %v3864_v30 = vpop.f32.mrb[136].mxu1 }
 0x4c4   :  { %v3294_v1 = vadd.f32 %v3864_v30, %v4917_v58  ;;  %v3285_v22 = vpop.f32.mrb[137].mxu1 }
 0x4c5   :  { %v3286_v45 = vadd.f32 %v4917_v58, %v3285_v22  ;;  %v3865_v50 = vpop.f32.mrb[138].mxu1 }
 0x4c6   :  { %v3326_v3 = vmax.f32 %v3294_v1, 0.0  ;;  %v3297_v53 = vadd.f32 %v3865_v50, %v4917_v58  ;;  %v3288_v31 = vpop.f32.mrb[139].mxu1 }
 0x4c7   :  { %v3324_v47 = vmax.f32 %v3286_v45, 0.0  ;;  %v3289_v52 = vadd.f32 %v4917_v58, %v3288_v31 }
 0x4c8   :  { %v3327_v20 = vmax.f32 %v3297_v53, 0.0  ;;  %v3349_v21 = vmul.f32 %v4924_v40, %v3326_v3 }
 0x4c9   :  { %v3325_v36 = vmax.f32 %v3289_v52, 0.0  ;;  %v3347_v17 = vmul.f32 %v4924_v40, %v3324_v47 }
 0x4ca   :  { %v3386_v62 = vsel %vm3355_vm1, %v3349_v21, 0.0  ;;  %v3350_v19 = vmul.f32 %v4924_v40, %v3327_v20 }
 0x4cb   :  { %3387 = vadd.xlane.f32.xlu0 %v3386_v62  ;;  %v3348_v60 = vmul.f32 %v4924_v40, %v3325_v36  ;;  %v3380_v56 = vsel %vm3355_vm1, %v3347_v17, 0.0 }
 0x4cc   :  { %v3389_v54 = vsel %vm3355_vm1, %v3350_v19, 0.0 }
 0x4cd   :  { %3390 = vadd.xlane.f32.xlu1 %v3389_v54  ;;  %v3383_v57 = vsel %vm3355_vm1, %v3348_v60, 0.0 }
 0x4cf   :  { %3381 = vadd.xlane.f32.xlu0 %v3380_v56 }
 0x4d1   :  { %3384 = vadd.xlane.f32.xlu1 %v3383_v57 }
 0x4d3   :  { %v3868_v46 = vpop.f32.mrb[140].mxu1 }
 0x4d4   :  { %v3310_v11 = vadd.f32 %v3868_v46, %v4917_v58  ;;  %v3301_v59 = vpop.f32.mrb[141].mxu1 }
 0x4d5   :  { %v3302_v61 = vadd.f32 %v4917_v58, %v3301_v59  ;;  %v3869_v2 = vpop.f32.mrb[142].mxu1 }
 0x4d6   :  { %v3313_v16 = vadd.f32 %v3869_v2, %v4917_v58  ;;  %v3304_v5 = vpop.f32.mrb[143].mxu1  ;;  %v3330_v7 = vmax.f32 %v3310_v11, 0.0 }
 0x4d7   :  { %v3328_v8 = vmax.f32 %v3302_v61, 0.0  ;;  %v3305_v9 = vadd.f32 %v4917_v58, %v3304_v5 }
 0x4d8   :  { %v3331_v51 = vmax.f32 %v3313_v16, 0.0  ;;  %v3353_v63 = vmul.f32 %v4924_v40, %v3330_v7 }
 0x4d9   :  { %v3329_v10 = vmax.f32 %v3305_v9, 0.0  ;;  %v3351_v13 = vmul.f32 %v4924_v40, %v3328_v8 }
 0x4da   :  { %v3354_v34 = vmul.f32 %v4924_v40, %v3331_v51  ;;  %v3398_v15 = vsel %vm3355_vm1, %v3353_v63, 0.0 }
 0x4db   :  { %v3392_v14 = vsel %vm3355_vm1, %v3351_v13, 0.0  ;;  %v3352_v18 = vmul.f32 %v4924_v40, %v3329_v10 }
 0x4dc   :  { %3393 = vadd.xlane.f32.xlu0 %v3392_v14  ;;  %v3401_v58 = vsel %vm3355_vm1, %v3354_v34, 0.0 }
 0x4dd   :  { %v3395_v12 = vsel %vm3355_vm1, %v3352_v18, 0.0 }
 0x4de   :  { %3396 = vadd.xlane.f32.xlu1 %v3395_v12 }
 0x4e0   :  { %3399 = vadd.xlane.f32.xlu0 %v3398_v15 }
 0x4e2   :  { %3402 = vadd.xlane.f32.xlu1 %v3401_v58 }
 0x538   :  { %v3364_v49 = vpop.xlane.xlu1 %3363 }
 0x539   :  { %v3413_v32 = vadd.f32 %v3769_v4, %v3364_v49  ;;  %v3358_v43 = vpop.xlane.xlu0 %3357 }
 0x53a   :  { %v3411_v33 = vadd.f32 %v3769_v4, %v3358_v43 }
 0x53b   :  { %v3429_v42 = vmax.f32 %v3413_v32, 0.0 }
 0x53c   :  { %v3427_v23 = vmax.f32 %v3411_v33, 0.0  ;;  %v3367_v24 = vpop.xlane.xlu1 %3366 }
 0x53d   :  { %3446 = vst.msk [vmem:[%s5047_s11 + $0x10] sm:$0xff] %vm3443_vm2, %v3429_v42  ;;  %v3414_v40 = vadd.f32 %v3769_v4, %v3367_v24  ;;  %v3361_v26 = vpop.xlane.xlu0 %3360 }
 0x53e   :  { %3444 = vst.msk [vmem:[%s5047_s11] sm:$0xff] %vm3443_vm2, %v3427_v23  ;;  %v3412_v27 = vadd.f32 %v3769_v4, %v3361_v26 }
 0x53f   :  { %v3430_v6 = vmax.f32 %v3414_v40, 0.0 }
 0x540   :  { %v3428_v28 = vmax.f32 %v3412_v27, 0.0 }
 0x541   :  { %3447 = vst.msk [vmem:[%s5047_s11 + $0x18] sm:$0xff] %vm3443_vm2, %v3430_v6 }
 0x542   :  { %3445 = vst.msk [vmem:[%s5047_s11 + $0x8] sm:$0xff] %vm3443_vm2, %v3428_v28 }
 0x548   :  { %v3376_v35 = vpop.xlane.xlu0 %3375 }
 0x549   :  { %v3417_v0 = vadd.f32 %v3769_v4, %v3376_v35 }
 0x54a   :  { %v3379_v37 = vpop.xlane.xlu1 %3378 }
 0x54b   :  { %v3433_v38 = vmax.f32 %v3417_v0, 0.0  ;;  %v3418_v39 = vadd.f32 %v3769_v4, %v3379_v37 }
 0x54c   :  { %v3370_v41 = vpop.xlane.xlu0 %3369 }
 0x54d   :  { %3450 = vst.msk [vmem:[%s5047_s11 + $0x30] sm:$0xff] %vm3443_vm2, %v3433_v38  ;;  %v3434_v29 = vmax.f32 %v3418_v39, 0.0  ;;  %v3415_v55 = vadd.f32 %v3769_v4, %v3370_v41 }
 0x54e   :  { %v3373_v48 = vpop.xlane.xlu1 %3372 }
 0x54f   :  { %3451 = vst.msk [vmem:[%s5047_s11 + $0x38] sm:$0xff] %vm3443_vm2, %v3434_v29  ;;  %v3431_v44 = vmax.f32 %v3415_v55, 0.0  ;;  %v3416_v25 = vadd.f32 %v3769_v4, %v3373_v48 }
 0x551   :  { %3448 = vst.msk [vmem:[%s5047_s11 + $0x20] sm:$0xff] %vm3443_vm2, %v3431_v44  ;;  %v3432_v30 = vmax.f32 %v3416_v25, 0.0 }
 0x553   :  { %3449 = vst.msk [vmem:[%s5047_s11 + $0x28] sm:$0xff] %vm3443_vm2, %v3432_v30 }
 0x558   :  { %v3388_v1 = vpop.xlane.xlu0 %3387 }
 0x559   :  { %v3421_v22 = vadd.f32 %v3769_v4, %v3388_v1 }
 0x55a   :  { %v3391_v45 = vpop.xlane.xlu1 %3390 }
 0x55b   :  { %v3437_v50 = vmax.f32 %v3421_v22, 0.0  ;;  %v3422_v3 = vadd.f32 %v3769_v4, %v3391_v45 }
 0x55c   :  { %v3382_v53 = vpop.xlane.xlu0 %3381 }
 0x55d   :  { %3454 = vst.msk [vmem:[%s5047_s11 + $0x50] sm:$0xff] %vm3443_vm2, %v3437_v50  ;;  %v3438_v31 = vmax.f32 %v3422_v3, 0.0  ;;  %v3419_v47 = vadd.f32 %v3769_v4, %v3382_v53 }
 0x55e   :  { %v3385_v52 = vpop.xlane.xlu1 %3384 }
 0x55f   :  { %3455 = vst.msk [vmem:[%s5047_s11 + $0x58] sm:$0xff] %vm3443_vm2, %v3438_v31  ;;  %v3435_v20 = vmax.f32 %v3419_v47, 0.0  ;;  %v3420_v21 = vadd.f32 %v3769_v4, %v3385_v52 }
 0x561   :  { %3452 = vst.msk [vmem:[%s5047_s11 + $0x40] sm:$0xff] %vm3443_vm2, %v3435_v20  ;;  %v3436_v36 = vmax.f32 %v3420_v21, 0.0 }
 0x563   :  { %3453 = vst.msk [vmem:[%s5047_s11 + $0x48] sm:$0xff] %vm3443_vm2, %v3436_v36 }
 0x569   :  { %v3394_v62 = vpop.xlane.xlu0 %3393 }
 0x56a   :  { %v3423_v19 = vadd.f32 %v3769_v4, %v3394_v62 }
 0x56b   :  { %v3397_v17 = vpop.xlane.xlu1 %3396 }
 0x56c   :  { %v3439_v54 = vmax.f32 %v3423_v19, 0.0  ;;  %v3424_v60 = vadd.f32 %v3769_v4, %v3397_v17 }
 0x56d   :  { %v3400_v56 = vpop.xlane.xlu0 %3399 }
 0x56e   :  { %3456 = vst.msk [vmem:[%s5047_s11 + $0x60] sm:$0xff] %vm3443_vm2, %v3439_v54  ;;  %v3440_v57 = vmax.f32 %v3424_v60, 0.0  ;;  %v3425_v46 = vadd.f32 %v3769_v4, %v3400_v56 }
 0x56f   :  { %v3403_v11 = vpop.xlane.xlu1 %3402 }
 0x570   :  { %3457 = vst.msk [vmem:[%s5047_s11 + $0x68] sm:$0xff] %vm3443_vm2, %v3440_v57  ;;  %v3441_v59 = vmax.f32 %v3425_v46, 0.0  ;;  %v3426_v61 = vadd.f32 %v3769_v4, %v3403_v11 }
 0x572   :  { %3458 = vst.msk [vmem:[%s5047_s11 + $0x70] sm:$0xff] %vm3443_vm2, %v3441_v59  ;;  %v3442_v2 = vmax.f32 %v3426_v61, 0.0 }
 0x574   :  { %3459 = vst.msk [vmem:[%s5047_s11 + $0x78] sm:$0xff] %vm3443_vm2, %v3442_v2 }
 0x575   :  { %3464 = vsyncpa [#allocation4], 1 }
 0x576   :  { %3465 = vsyncpa [#allocation6], 1 }

</bundles_post_ra>
